<compile_context>
chip_gen: v7x
topology: tpu7x:2x2x1
jax: 0.10.0
libtpu: 0.0.40
codegen_flags: <defaults>
</compile_context>

<pallas_src>
import functools

import jax
import jax.numpy as jnp
from jax import lax
from jax.experimental import pallas as pl
from jax.experimental.pallas import tpu as pltpu

_SUBLANES = 8


def lstm_attn_kernel(
    x_ref,        # (S*Bp, D)  bf16 input sequence, row = t*Bp + b
    wih0_ref,     # (D, 4H)    bf16 layer-0 input->gates weights (i|f|g|o)
    whh0_ref,     # (H, 4H)    bf16 layer-0 hidden->gates weights
    b0_ref,       # (1, 4H)    f32  layer-0 combined bias (b_ih + b_hh)
    wih1_ref,     # (H, 4H)    bf16 layer-1 input->gates weights
    whh1_ref,     # (H, 4H)    bf16 layer-1 hidden->gates weights
    b1_ref,       # (1, 4H)    f32  layer-1 combined bias
    wch_ref,      # (H, H)     bf16 concat-Linear weights, `hidden` half
    wcc_ref,      # (H, H)     bf16 concat-Linear weights, `context` half
    bc_ref,       # (1, H)     f32  concat-Linear bias
    wcls_ref,     # (H, O)     bf16 classifier weights
    bcls_ref,     # (1, O)     f32  classifier bias
    out_ref,      # (Bp, O)    f32  output logits (padded batch)
    l0_ref,       # scratch (S*Bp, H) f32: layer-0 hidden states over time
    l1_ref,       # scratch (S*Bp, H) f32: layer-1 hidden states (lstm_out)
    *,
    S, Bp,
):
    H = whh0_ref.shape[0]

    def run_layer(pre, whh_bf16, out_scr):
        """One LSTM layer over the full (unrolled) sequence.

        `pre` already holds x_t @ Wih + b for every timestep (register
        resident), so the serial dependency per step is only  h @ Whh
        (+ add, activations).  PyTorch gate order: i, f, g, o.
        """
        h = jnp.zeros((Bp, H), jnp.float32)
        c = jnp.zeros((Bp, H), jnp.float32)
        for t in range(S):                      # fully unrolled (S static)
            r0 = t * Bp                         # sublane-aligned (Bp == 8)
            gates = pre[r0:r0 + Bp, :] + jnp.dot(
                h.astype(jnp.bfloat16), whh_bf16,
                preferred_element_type=jnp.float32)          # (Bp, 4H) f32
            # Activate the whole gates vreg once (EUP), slice afterwards.
            sig = jax.nn.sigmoid(gates)
            tnh = jnp.tanh(gates)
            i_g = sig[:, 0 * H:1 * H]
            f_g = sig[:, 1 * H:2 * H]
            g_g = tnh[:, 2 * H:3 * H]
            o_g = sig[:, 3 * H:4 * H]
            c = f_g * c + i_g * g_g
            h = o_g * jnp.tanh(c)
            out_scr[r0:r0 + Bp, :] = h          # aligned (Bp, H) store
        return h

    # ---- hoisted input->gates projection, layer 0 (bias folded in) --------
    pre0 = jnp.dot(x_ref[...], wih0_ref[...],
                   preferred_element_type=jnp.float32) + b0_ref[...]
    run_layer(pre0, whh0_ref[...], l0_ref)

    # ---- hoisted input->gates projection, layer 1 --------------------------
    pre1 = jnp.dot(l0_ref[...].astype(jnp.bfloat16), wih1_ref[...],
                   preferred_element_type=jnp.float32) + b1_ref[...]
    h_last = run_layer(pre1, whh1_ref[...], l1_ref)   # (Bp, H) == h[-1]

    # ---- Luong attention (on flat seq-major lstm_out) -----------------------
    lstm_out = l1_ref[...]                                  # (S*Bp, H) f32
    # scores[r, b] = <lstm_out[r], h_last[b]>; only r % Bp == b entries valid.
    scores = lax.dot_general(
        lstm_out, h_last, (((1,), (1,)), ((), ())),
        preferred_element_type=jnp.float32)                 # (S*Bp, Bp)
    r_ids = lax.broadcasted_iota(jnp.int32, (S * Bp, Bp), 0)
    b_ids = lax.broadcasted_iota(jnp.int32, (S * Bp, Bp), 1)
    same_batch = (r_ids % Bp) == b_ids
    scores = jnp.where(same_batch, scores, -jnp.inf)
    # softmax over the sequence (per batch column); masked entries -> exp = 0
    m = jnp.max(scores, axis=0, keepdims=True)              # (1, Bp)
    e = jnp.exp(scores - m)                                 # (S*Bp, Bp)
    denom = jnp.sum(e, axis=0, keepdims=True)               # (1, Bp)
    attnw = e * pl.reciprocal(denom, approx=True)           # (S*Bp, Bp)
    # context[b, h] = sum_r attnw[r, b] * lstm_out[r, h]
    context = lax.dot_general(
        attnw, lstm_out, (((0,), (0,)), ((), ())),
        preferred_element_type=jnp.float32)                 # (Bp, H)

    # concat([hidden, context]) @ Wc^T + bc  (split into two matmuls so the
    # activations never need a lane-dim concat)
    attn_out = jnp.tanh(
        jnp.dot(h_last.astype(jnp.bfloat16), wch_ref[...],
                preferred_element_type=jnp.float32)
        + jnp.dot(context.astype(jnp.bfloat16), wcc_ref[...],
                  preferred_element_type=jnp.float32)
        + bc_ref[...]
    )                                                        # (Bp, H)

    # ---- classifier ---------------------------------------------------------
    out_ref[...] = (
        jnp.dot(attn_out.astype(jnp.bfloat16), wcls_ref[...],
                preferred_element_type=jnp.float32)
        + bcls_ref[...]
    )


def lstm_attn_forward(x_bcs, params):
    """x_bcs: (batch, channels, seq) like the PyTorch module input."""
    x = jnp.transpose(x_bcs, (2, 0, 1)).astype(jnp.float32)  # (S, B, D)
    S, B, D = x.shape
    # Pad batch to a full sublane group so per-timestep slices are aligned.
    Bp = max(_SUBLANES, ((B + _SUBLANES - 1) // _SUBLANES) * _SUBLANES)
    if Bp != B:
        x = jnp.pad(x, ((0, 0), (0, Bp - B), (0, 0)))
    x_flat = x.reshape(S * Bp, D).astype(jnp.bfloat16)       # row = t*Bp + b
    H = params["whh0"].shape[0]
    O = params["wcls"].shape[1]

    bf16 = lambda w: w.astype(jnp.bfloat16)
    args = (
        x_flat,
        bf16(params["wih0"]), bf16(params["whh0"]), params["b0"],
        bf16(params["wih1"]), bf16(params["whh1"]), params["b1"],
        bf16(params["wch"]), bf16(params["wcc"]), params["bc"],
        bf16(params["wcls"]), params["bcls"],
    )

    kernel = functools.partial(lstm_attn_kernel, S=S, Bp=Bp)
    out = pl.pallas_call(
        kernel,
        out_shape=jax.ShapeDtypeStruct((Bp, O), jnp.float32),
        in_specs=[pl.BlockSpec(memory_space=pltpu.MemorySpace.VMEM)] * len(args),
        out_specs=pl.BlockSpec(memory_space=pltpu.MemorySpace.VMEM),
        scratch_shapes=[
            pltpu.VMEM((S * Bp, H), jnp.float32),   # layer-0 hidden states
            pltpu.VMEM((S * Bp, H), jnp.float32),   # layer-1 hidden states
        ],
    )(*args)
    return out[:B]


# ---------------------------- pure-JAX reference ----------------------------
def lstm_attn_reference(x_bcs, params):
    """Float32 reference matching PyTorch inference semantics."""
    x = jnp.transpose(x_bcs, (2, 0, 1)).astype(jnp.float32)  # (S, B, D)
    S, B, _ = x.shape
    H = params["whh0"].shape[0]

    def run_layer(seq_in, wih, whh, b):
        def step(carry, x_t):
            h, c = carry
            gates = x_t @ wih + h @ whh + b
            i_g = jax.nn.sigmoid(gates[:, 0 * H:1 * H])
            f_g = jax.nn.sigmoid(gates[:, 1 * H:2 * H])
            g_g = jnp.tanh(gates[:, 2 * H:3 * H])
            o_g = jax.nn.sigmoid(gates[:, 3 * H:4 * H])
            c_new = f_g * c + i_g * g_g
            h_new = o_g * jnp.tanh(c_new)
            return (h_new, c_new), h_new

        init = (jnp.zeros((B, H), jnp.float32), jnp.zeros((B, H), jnp.float32))
        (h_fin, _), outs = lax.scan(step, init, seq_in)
        return outs, h_fin

    l0, _ = run_layer(x, params["wih0"], params["whh0"], params["b0"])
    l1, h_last = run_layer(l0, params["wih1"], params["whh1"], params["b1"])

    scores = jnp.sum(l1 * h_last[None, :, :], axis=-1)        # (S, B)
    attn = jax.nn.softmax(scores, axis=0)
    context = jnp.sum(l1 * attn[:, :, None], axis=0)          # (B, H)
    attn_out = jnp.tanh(h_last @ params["wch"] + context @ params["wcc"] + params["bc"])
    return attn_out @ params["wcls"] + params["bcls"]


def init_params(key, input_dim, hidden_dim, output_dim):
    """Deterministic synthetic init (uniform(-1/sqrt(H), 1/sqrt(H)) like PyTorch)."""
    k = 1.0 / jnp.sqrt(jnp.float32(hidden_dim))
    keys = jax.random.split(key, 12)
    u = lambda kk, shape: jax.random.uniform(kk, shape, jnp.float32, -k, k)
    H, D, O = hidden_dim, input_dim, output_dim
    return {
        "wih0": u(keys[0], (D, 4 * H)),
        "whh0": u(keys[1], (H, 4 * H)),
        "b0":   u(keys[2], (1, 4 * H)),   # b_ih + b_hh folded together
        "wih1": u(keys[3], (H, 4 * H)),
        "whh1": u(keys[4], (H, 4 * H)),
        "b1":   u(keys[5], (1, 4 * H)),
        "wch":  u(keys[6], (H, H)),       # concat-Linear, `hidden` half
        "wcc":  u(keys[7], (H, H)),       # concat-Linear, `context` half
        "bc":   u(keys[8], (1, H)),
        "wcls": u(keys[9], (H, O)),
        "bcls": u(keys[10], (1, O)),
    }


if __name__ == "__main__":
    # small shapes consistent with the module: batch=2, channels(input_dim)=4,
    # seq=8, hidden=32, num_layers=2 (fixed in kernel), output_dim=1
    batch, input_dim, seq, hidden_dim, output_dim = 2, 4, 8, 32, 1

    key = jax.random.PRNGKey(0)
    kx, kp = jax.random.split(key)
    x = jax.random.normal(kx, (batch, input_dim, seq), jnp.float32)
    params = init_params(kp, input_dim, hidden_dim, output_dim)

    out = lstm_attn_forward(x, params)
    out = jax.block_until_ready(out)

    ref = lstm_attn_reference(x, params)
    assert out.shape == (batch, output_dim)
    assert bool(jnp.all(jnp.isfinite(out)))
    # Kernel matmul operands are bf16 (f32 accumulation), which introduces
    # ~1e-3-level rounding through the 2*S-step recurrence.
    assert bool(jnp.allclose(out, ref, atol=2e-2, rtol=2e-2)), (out, ref)

    # TODO(synk): training-mode inter-layer dropout (p=0.8) and the unused
    # fc_block from __init__ are not part of the inference forward path.
    print("KERNEL_OK")
</pallas_src>

<mosaic_0001>
module attributes {stable_mosaic.version = 11 : i64} {
  func.func @lstm_attn_kernel(%arg0: memref<64x4xbf16, #tpu.memory_space<vmem>>, %arg1: memref<4x128xbf16, #tpu.memory_space<vmem>>, %arg2: memref<32x128xbf16, #tpu.memory_space<vmem>>, %arg3: memref<1x128xf32, #tpu.memory_space<vmem>>, %arg4: memref<32x128xbf16, #tpu.memory_space<vmem>>, %arg5: memref<32x128xbf16, #tpu.memory_space<vmem>>, %arg6: memref<1x128xf32, #tpu.memory_space<vmem>>, %arg7: memref<32x32xbf16, #tpu.memory_space<vmem>>, %arg8: memref<32x32xbf16, #tpu.memory_space<vmem>>, %arg9: memref<1x32xf32, #tpu.memory_space<vmem>>, %arg10: memref<32x1xbf16, #tpu.memory_space<vmem>>, %arg11: memref<1x1xf32, #tpu.memory_space<vmem>>, %arg12: memref<8x1xf32, #tpu.memory_space<vmem>>, %arg13: memref<64x32xf32, #tpu.memory_space<vmem>>, %arg14: memref<64x32xf32, #tpu.memory_space<vmem>>) attributes {dimension_semantics = [], scalar_prefetch = 0 : i64, scratch_operands = 2 : i64, tpu.core_type = #tpu.core_type<tc>} {
    %c0 = arith.constant 0 : index
    %c0_0 = arith.constant 0 : index
    %0 = vector.load %arg0[%c0, %c0_0] : memref<64x4xbf16, #tpu.memory_space<vmem>>, vector<64x4xbf16>
    %c0_1 = arith.constant 0 : index
    %c0_2 = arith.constant 0 : index
    %1 = vector.load %arg1[%c0_1, %c0_2] : memref<4x128xbf16, #tpu.memory_space<vmem>>, vector<4x128xbf16>
    %cst = arith.constant dense<0.000000e+00> : vector<64x128xf32>
    %2 = tpu.matmul %0, %1, %cst {dimension_numbers = #tpu.dot_dimension_numbers<[1], [0], [0], [1], [0, 0, 1, 1], [], []>} : vector<64x4xbf16>, vector<4x128xbf16>, vector<64x128xf32> -> vector<64x128xf32>
    %c0_3 = arith.constant 0 : index
    %c0_4 = arith.constant 0 : index
    %3 = vector.load %arg3[%c0_3, %c0_4] : memref<1x128xf32, #tpu.memory_space<vmem>>, vector<1x128xf32>
    %4 = vector.broadcast %3 : vector<1x128xf32> to vector<64x128xf32>
    %5 = arith.addf %2, %4 : vector<64x128xf32>
    %c0_5 = arith.constant 0 : index
    %c0_6 = arith.constant 0 : index
    %6 = vector.load %arg2[%c0_5, %c0_6] : memref<32x128xbf16, #tpu.memory_space<vmem>>, vector<32x128xbf16>
    %cst_7 = arith.constant 0.000000e+00 : f32
    %7 = vector.broadcast %cst_7 : f32 to vector<8x32xf32>
    %cst_8 = arith.constant 0.000000e+00 : f32
    %8 = vector.broadcast %cst_8 : f32 to vector<8x32xf32>
    %9 = vector.extract_strided_slice %5 {offsets = [0, 0], sizes = [8, 128], strides = [1, 1]} : vector<64x128xf32> to vector<8x128xf32>
    %10 = arith.truncf %7 : vector<8x32xf32> to vector<8x32xbf16>
    %cst_9 = arith.constant dense<0.000000e+00> : vector<8x128xf32>
    %11 = tpu.matmul %10, %6, %cst_9 {dimension_numbers = #tpu.dot_dimension_numbers<[1], [0], [0], [1], [0, 0, 1, 1], [], []>} : vector<8x32xbf16>, vector<32x128xbf16>, vector<8x128xf32> -> vector<8x128xf32>
    %12 = arith.addf %9, %11 : vector<8x128xf32>
    %13 = arith.negf %12 : vector<8x128xf32>
    %14 = math.exp %13 : vector<8x128xf32>
    %cst_10 = arith.constant 1.000000e+00 : f32
    %15 = vector.broadcast %cst_10 : f32 to vector<8x128xf32>
    %16 = arith.addf %15, %14 : vector<8x128xf32>
    %17 = arith.divf %15, %16 : vector<8x128xf32>
    %18 = math.tanh %12 : vector<8x128xf32>
    %19 = vector.extract_strided_slice %17 {offsets = [0, 0], sizes = [8, 32], strides = [1, 1]} : vector<8x128xf32> to vector<8x32xf32>
    %20 = vector.extract_strided_slice %17 {offsets = [0, 32], sizes = [8, 32], strides = [1, 1]} : vector<8x128xf32> to vector<8x32xf32>
    %21 = vector.extract_strided_slice %18 {offsets = [0, 64], sizes = [8, 32], strides = [1, 1]} : vector<8x128xf32> to vector<8x32xf32>
    %22 = vector.extract_strided_slice %17 {offsets = [0, 96], sizes = [8, 32], strides = [1, 1]} : vector<8x128xf32> to vector<8x32xf32>
    %23 = arith.mulf %20, %8 : vector<8x32xf32>
    %24 = arith.mulf %19, %21 : vector<8x32xf32>
    %25 = arith.addf %23, %24 : vector<8x32xf32>
    %26 = math.tanh %25 : vector<8x32xf32>
    %27 = arith.mulf %22, %26 : vector<8x32xf32>
    %c0_11 = arith.constant 0 : index
    %c0_12 = arith.constant 0 : index
    %28 = vector.load %arg13[%c0_11, %c0_12] : memref<64x32xf32, #tpu.memory_space<vmem>>, vector<8x32xf32>
    tpu.vector_store %arg13[%c0_11, %c0_12], %27 {strides = array<i32>} : memref<64x32xf32, #tpu.memory_space<vmem>>, vector<8x32xf32>,
    %29 = vector.extract_strided_slice %5 {offsets = [8, 0], sizes = [8, 128], strides = [1, 1]} : vector<64x128xf32> to vector<8x128xf32>
    %30 = arith.truncf %27 : vector<8x32xf32> to vector<8x32xbf16>
    %cst_13 = arith.constant dense<0.000000e+00> : vector<8x128xf32>
    %31 = tpu.matmul %30, %6, %cst_13 {dimension_numbers = #tpu.dot_dimension_numbers<[1], [0], [0], [1], [0, 0, 1, 1], [], []>} : vector<8x32xbf16>, vector<32x128xbf16>, vector<8x128xf32> -> vector<8x128xf32>
    %32 = arith.addf %29, %31 : vector<8x128xf32>
    %33 = arith.negf %32 : vector<8x128xf32>
    %34 = math.exp %33 : vector<8x128xf32>
    %cst_14 = arith.constant 1.000000e+00 : f32
    %35 = vector.broadcast %cst_14 : f32 to vector<8x128xf32>
    %36 = arith.addf %35, %34 : vector<8x128xf32>
    %37 = arith.divf %35, %36 : vector<8x128xf32>
    %38 = math.tanh %32 : vector<8x128xf32>
    %39 = vector.extract_strided_slice %37 {offsets = [0, 0], sizes = [8, 32], strides = [1, 1]} : vector<8x128xf32> to vector<8x32xf32>
    %40 = vector.extract_strided_slice %37 {offsets = [0, 32], sizes = [8, 32], strides = [1, 1]} : vector<8x128xf32> to vector<8x32xf32>
    %41 = vector.extract_strided_slice %38 {offsets = [0, 64], sizes = [8, 32], strides = [1, 1]} : vector<8x128xf32> to vector<8x32xf32>
    %42 = vector.extract_strided_slice %37 {offsets = [0, 96], sizes = [8, 32], strides = [1, 1]} : vector<8x128xf32> to vector<8x32xf32>
    %43 = arith.mulf %40, %25 : vector<8x32xf32>
    %44 = arith.mulf %39, %41 : vector<8x32xf32>
    %45 = arith.addf %43, %44 : vector<8x32xf32>
    %46 = math.tanh %45 : vector<8x32xf32>
    %47 = arith.mulf %42, %46 : vector<8x32xf32>
    %c8 = arith.constant 8 : index
    %c0_15 = arith.constant 0 : index
    %48 = vector.load %arg13[%c8, %c0_15] : memref<64x32xf32, #tpu.memory_space<vmem>>, vector<8x32xf32>
    tpu.vector_store %arg13[%c8, %c0_15], %47 {strides = array<i32>} : memref<64x32xf32, #tpu.memory_space<vmem>>, vector<8x32xf32>,
    %49 = vector.extract_strided_slice %5 {offsets = [16, 0], sizes = [8, 128], strides = [1, 1]} : vector<64x128xf32> to vector<8x128xf32>
    %50 = arith.truncf %47 : vector<8x32xf32> to vector<8x32xbf16>
    %cst_16 = arith.constant dense<0.000000e+00> : vector<8x128xf32>
    %51 = tpu.matmul %50, %6, %cst_16 {dimension_numbers = #tpu.dot_dimension_numbers<[1], [0], [0], [1], [0, 0, 1, 1], [], []>} : vector<8x32xbf16>, vector<32x128xbf16>, vector<8x128xf32> -> vector<8x128xf32>
    %52 = arith.addf %49, %51 : vector<8x128xf32>
    %53 = arith.negf %52 : vector<8x128xf32>
    %54 = math.exp %53 : vector<8x128xf32>
    %cst_17 = arith.constant 1.000000e+00 : f32
    %55 = vector.broadcast %cst_17 : f32 to vector<8x128xf32>
    %56 = arith.addf %55, %54 : vector<8x128xf32>
    %57 = arith.divf %55, %56 : vector<8x128xf32>
    %58 = math.tanh %52 : vector<8x128xf32>
    %59 = vector.extract_strided_slice %57 {offsets = [0, 0], sizes = [8, 32], strides = [1, 1]} : vector<8x128xf32> to vector<8x32xf32>
    %60 = vector.extract_strided_slice %57 {offsets = [0, 32], sizes = [8, 32], strides = [1, 1]} : vector<8x128xf32> to vector<8x32xf32>
    %61 = vector.extract_strided_slice %58 {offsets = [0, 64], sizes = [8, 32], strides = [1, 1]} : vector<8x128xf32> to vector<8x32xf32>
    %62 = vector.extract_strided_slice %57 {offsets = [0, 96], sizes = [8, 32], strides = [1, 1]} : vector<8x128xf32> to vector<8x32xf32>
    %63 = arith.mulf %60, %45 : vector<8x32xf32>
    %64 = arith.mulf %59, %61 : vector<8x32xf32>
    %65 = arith.addf %63, %64 : vector<8x32xf32>
    %66 = math.tanh %65 : vector<8x32xf32>
    %67 = arith.mulf %62, %66 : vector<8x32xf32>
    %c16 = arith.constant 16 : index
    %c0_18 = arith.constant 0 : index
    %68 = vector.load %arg13[%c16, %c0_18] : memref<64x32xf32, #tpu.memory_space<vmem>>, vector<8x32xf32>
    tpu.vector_store %arg13[%c16, %c0_18], %67 {strides = array<i32>} : memref<64x32xf32, #tpu.memory_space<vmem>>, vector<8x32xf32>,
    %69 = vector.extract_strided_slice %5 {offsets = [24, 0], sizes = [8, 128], strides = [1, 1]} : vector<64x128xf32> to vector<8x128xf32>
    %70 = arith.truncf %67 : vector<8x32xf32> to vector<8x32xbf16>
    %cst_19 = arith.constant dense<0.000000e+00> : vector<8x128xf32>
    %71 = tpu.matmul %70, %6, %cst_19 {dimension_numbers = #tpu.dot_dimension_numbers<[1], [0], [0], [1], [0, 0, 1, 1], [], []>} : vector<8x32xbf16>, vector<32x128xbf16>, vector<8x128xf32> -> vector<8x128xf32>
    %72 = arith.addf %69, %71 : vector<8x128xf32>
    %73 = arith.negf %72 : vector<8x128xf32>
    %74 = math.exp %73 : vector<8x128xf32>
    %cst_20 = arith.constant 1.000000e+00 : f32
    %75 = vector.broadcast %cst_20 : f32 to vector<8x128xf32>
    %76 = arith.addf %75, %74 : vector<8x128xf32>
    %77 = arith.divf %75, %76 : vector<8x128xf32>
    %78 = math.tanh %72 : vector<8x128xf32>
    %79 = vector.extract_strided_slice %77 {offsets = [0, 0], sizes = [8, 32], strides = [1, 1]} : vector<8x128xf32> to vector<8x32xf32>
    %80 = vector.extract_strided_slice %77 {offsets = [0, 32], sizes = [8, 32], strides = [1, 1]} : vector<8x128xf32> to vector<8x32xf32>
    %81 = vector.extract_strided_slice %78 {offsets = [0, 64], sizes = [8, 32], strides = [1, 1]} : vector<8x128xf32> to vector<8x32xf32>
    %82 = vector.extract_strided_slice %77 {offsets = [0, 96], sizes = [8, 32], strides = [1, 1]} : vector<8x128xf32> to vector<8x32xf32>
    %83 = arith.mulf %80, %65 : vector<8x32xf32>
    %84 = arith.mulf %79, %81 : vector<8x32xf32>
    %85 = arith.addf %83, %84 : vector<8x32xf32>
    %86 = math.tanh %85 : vector<8x32xf32>
    %87 = arith.mulf %82, %86 : vector<8x32xf32>
    %c24 = arith.constant 24 : index
    %c0_21 = arith.constant 0 : index
    %88 = vector.load %arg13[%c24, %c0_21] : memref<64x32xf32, #tpu.memory_space<vmem>>, vector<8x32xf32>
    tpu.vector_store %arg13[%c24, %c0_21], %87 {strides = array<i32>} : memref<64x32xf32, #tpu.memory_space<vmem>>, vector<8x32xf32>,
    %89 = vector.extract_strided_slice %5 {offsets = [32, 0], sizes = [8, 128], strides = [1, 1]} : vector<64x128xf32> to vector<8x128xf32>
    %90 = arith.truncf %87 : vector<8x32xf32> to vector<8x32xbf16>
    %cst_22 = arith.constant dense<0.000000e+00> : vector<8x128xf32>
    %91 = tpu.matmul %90, %6, %cst_22 {dimension_numbers = #tpu.dot_dimension_numbers<[1], [0], [0], [1], [0, 0, 1, 1], [], []>} : vector<8x32xbf16>, vector<32x128xbf16>, vector<8x128xf32> -> vector<8x128xf32>
    %92 = arith.addf %89, %91 : vector<8x128xf32>
    %93 = arith.negf %92 : vector<8x128xf32>
    %94 = math.exp %93 : vector<8x128xf32>
    %cst_23 = arith.constant 1.000000e+00 : f32
    %95 = vector.broadcast %cst_23 : f32 to vector<8x128xf32>
    %96 = arith.addf %95, %94 : vector<8x128xf32>
    %97 = arith.divf %95, %96 : vector<8x128xf32>
    %98 = math.tanh %92 : vector<8x128xf32>
    %99 = vector.extract_strided_slice %97 {offsets = [0, 0], sizes = [8, 32], strides = [1, 1]} : vector<8x128xf32> to vector<8x32xf32>
    %100 = vector.extract_strided_slice %97 {offsets = [0, 32], sizes = [8, 32], strides = [1, 1]} : vector<8x128xf32> to vector<8x32xf32>
    %101 = vector.extract_strided_slice %98 {offsets = [0, 64], sizes = [8, 32], strides = [1, 1]} : vector<8x128xf32> to vector<8x32xf32>
    %102 = vector.extract_strided_slice %97 {offsets = [0, 96], sizes = [8, 32], strides = [1, 1]} : vector<8x128xf32> to vector<8x32xf32>
    %103 = arith.mulf %100, %85 : vector<8x32xf32>
    %104 = arith.mulf %99, %101 : vector<8x32xf32>
    %105 = arith.addf %103, %104 : vector<8x32xf32>
    %106 = math.tanh %105 : vector<8x32xf32>
    %107 = arith.mulf %102, %106 : vector<8x32xf32>
    %c32 = arith.constant 32 : index
    %c0_24 = arith.constant 0 : index
    %108 = vector.load %arg13[%c32, %c0_24] : memref<64x32xf32, #tpu.memory_space<vmem>>, vector<8x32xf32>
    tpu.vector_store %arg13[%c32, %c0_24], %107 {strides = array<i32>} : memref<64x32xf32, #tpu.memory_space<vmem>>, vector<8x32xf32>,
    %109 = vector.extract_strided_slice %5 {offsets = [40, 0], sizes = [8, 128], strides = [1, 1]} : vector<64x128xf32> to vector<8x128xf32>
    %110 = arith.truncf %107 : vector<8x32xf32> to vector<8x32xbf16>
    %cst_25 = arith.constant dense<0.000000e+00> : vector<8x128xf32>
    %111 = tpu.matmul %110, %6, %cst_25 {dimension_numbers = #tpu.dot_dimension_numbers<[1], [0], [0], [1], [0, 0, 1, 1], [], []>} : vector<8x32xbf16>, vector<32x128xbf16>, vector<8x128xf32> -> vector<8x128xf32>
    %112 = arith.addf %109, %111 : vector<8x128xf32>
    %113 = arith.negf %112 : vector<8x128xf32>
    %114 = math.exp %113 : vector<8x128xf32>
    %cst_26 = arith.constant 1.000000e+00 : f32
    %115 = vector.broadcast %cst_26 : f32 to vector<8x128xf32>
    %116 = arith.addf %115, %114 : vector<8x128xf32>
    %117 = arith.divf %115, %116 : vector<8x128xf32>
    %118 = math.tanh %112 : vector<8x128xf32>
    %119 = vector.extract_strided_slice %117 {offsets = [0, 0], sizes = [8, 32], strides = [1, 1]} : vector<8x128xf32> to vector<8x32xf32>
    %120 = vector.extract_strided_slice %117 {offsets = [0, 32], sizes = [8, 32], strides = [1, 1]} : vector<8x128xf32> to vector<8x32xf32>
    %121 = vector.extract_strided_slice %118 {offsets = [0, 64], sizes = [8, 32], strides = [1, 1]} : vector<8x128xf32> to vector<8x32xf32>
    %122 = vector.extract_strided_slice %117 {offsets = [0, 96], sizes = [8, 32], strides = [1, 1]} : vector<8x128xf32> to vector<8x32xf32>
    %123 = arith.mulf %120, %105 : vector<8x32xf32>
    %124 = arith.mulf %119, %121 : vector<8x32xf32>
    %125 = arith.addf %123, %124 : vector<8x32xf32>
    %126 = math.tanh %125 : vector<8x32xf32>
    %127 = arith.mulf %122, %126 : vector<8x32xf32>
    %c40 = arith.constant 40 : index
    %c0_27 = arith.constant 0 : index
    %128 = vector.load %arg13[%c40, %c0_27] : memref<64x32xf32, #tpu.memory_space<vmem>>, vector<8x32xf32>
    tpu.vector_store %arg13[%c40, %c0_27], %127 {strides = array<i32>} : memref<64x32xf32, #tpu.memory_space<vmem>>, vector<8x32xf32>,
    %129 = vector.extract_strided_slice %5 {offsets = [48, 0], sizes = [8, 128], strides = [1, 1]} : vector<64x128xf32> to vector<8x128xf32>
    %130 = arith.truncf %127 : vector<8x32xf32> to vector<8x32xbf16>
    %cst_28 = arith.constant dense<0.000000e+00> : vector<8x128xf32>
    %131 = tpu.matmul %130, %6, %cst_28 {dimension_numbers = #tpu.dot_dimension_numbers<[1], [0], [0], [1], [0, 0, 1, 1], [], []>} : vector<8x32xbf16>, vector<32x128xbf16>, vector<8x128xf32> -> vector<8x128xf32>
    %132 = arith.addf %129, %131 : vector<8x128xf32>
    %133 = arith.negf %132 : vector<8x128xf32>
    %134 = math.exp %133 : vector<8x128xf32>
    %cst_29 = arith.constant 1.000000e+00 : f32
    %135 = vector.broadcast %cst_29 : f32 to vector<8x128xf32>
    %136 = arith.addf %135, %134 : vector<8x128xf32>
    %137 = arith.divf %135, %136 : vector<8x128xf32>
    %138 = math.tanh %132 : vector<8x128xf32>
    %139 = vector.extract_strided_slice %137 {offsets = [0, 0], sizes = [8, 32], strides = [1, 1]} : vector<8x128xf32> to vector<8x32xf32>
    %140 = vector.extract_strided_slice %137 {offsets = [0, 32], sizes = [8, 32], strides = [1, 1]} : vector<8x128xf32> to vector<8x32xf32>
    %141 = vector.extract_strided_slice %138 {offsets = [0, 64], sizes = [8, 32], strides = [1, 1]} : vector<8x128xf32> to vector<8x32xf32>
    %142 = vector.extract_strided_slice %137 {offsets = [0, 96], sizes = [8, 32], strides = [1, 1]} : vector<8x128xf32> to vector<8x32xf32>
    %143 = arith.mulf %140, %125 : vector<8x32xf32>
    %144 = arith.mulf %139, %141 : vector<8x32xf32>
    %145 = arith.addf %143, %144 : vector<8x32xf32>
    %146 = math.tanh %145 : vector<8x32xf32>
    %147 = arith.mulf %142, %146 : vector<8x32xf32>
    %c48 = arith.constant 48 : index
    %c0_30 = arith.constant 0 : index
    %148 = vector.load %arg13[%c48, %c0_30] : memref<64x32xf32, #tpu.memory_space<vmem>>, vector<8x32xf32>
    tpu.vector_store %arg13[%c48, %c0_30], %147 {strides = array<i32>} : memref<64x32xf32, #tpu.memory_space<vmem>>, vector<8x32xf32>,
    %149 = vector.extract_strided_slice %5 {offsets = [56, 0], sizes = [8, 128], strides = [1, 1]} : vector<64x128xf32> to vector<8x128xf32>
    %150 = arith.truncf %147 : vector<8x32xf32> to vector<8x32xbf16>
    %cst_31 = arith.constant dense<0.000000e+00> : vector<8x128xf32>
    %151 = tpu.matmul %150, %6, %cst_31 {dimension_numbers = #tpu.dot_dimension_numbers<[1], [0], [0], [1], [0, 0, 1, 1], [], []>} : vector<8x32xbf16>, vector<32x128xbf16>, vector<8x128xf32> -> vector<8x128xf32>
    %152 = arith.addf %149, %151 : vector<8x128xf32>
    %153 = arith.negf %152 : vector<8x128xf32>
    %154 = math.exp %153 : vector<8x128xf32>
    %cst_32 = arith.constant 1.000000e+00 : f32
    %155 = vector.broadcast %cst_32 : f32 to vector<8x128xf32>
    %156 = arith.addf %155, %154 : vector<8x128xf32>
    %157 = arith.divf %155, %156 : vector<8x128xf32>
    %158 = math.tanh %152 : vector<8x128xf32>
    %159 = vector.extract_strided_slice %157 {offsets = [0, 0], sizes = [8, 32], strides = [1, 1]} : vector<8x128xf32> to vector<8x32xf32>
    %160 = vector.extract_strided_slice %157 {offsets = [0, 32], sizes = [8, 32], strides = [1, 1]} : vector<8x128xf32> to vector<8x32xf32>
    %161 = vector.extract_strided_slice %158 {offsets = [0, 64], sizes = [8, 32], strides = [1, 1]} : vector<8x128xf32> to vector<8x32xf32>
    %162 = vector.extract_strided_slice %157 {offsets = [0, 96], sizes = [8, 32], strides = [1, 1]} : vector<8x128xf32> to vector<8x32xf32>
    %163 = arith.mulf %160, %145 : vector<8x32xf32>
    %164 = arith.mulf %159, %161 : vector<8x32xf32>
    %165 = arith.addf %163, %164 : vector<8x32xf32>
    %166 = math.tanh %165 : vector<8x32xf32>
    %167 = arith.mulf %162, %166 : vector<8x32xf32>
    %c56 = arith.constant 56 : index
    %c0_33 = arith.constant 0 : index
    %168 = vector.load %arg13[%c56, %c0_33] : memref<64x32xf32, #tpu.memory_space<vmem>>, vector<8x32xf32>
    tpu.vector_store %arg13[%c56, %c0_33], %167 {strides = array<i32>} : memref<64x32xf32, #tpu.memory_space<vmem>>, vector<8x32xf32>,
    %c0_34 = arith.constant 0 : index
    %c0_35 = arith.constant 0 : index
    %169 = vector.load %arg13[%c0_34, %c0_35] : memref<64x32xf32, #tpu.memory_space<vmem>>, vector<64x32xf32>
    %170 = arith.truncf %169 : vector<64x32xf32> to vector<64x32xbf16>
    %c0_36 = arith.constant 0 : index
    %c0_37 = arith.constant 0 : index
    %171 = vector.load %arg4[%c0_36, %c0_37] : memref<32x128xbf16, #tpu.memory_space<vmem>>, vector<32x128xbf16>
    %cst_38 = arith.constant dense<0.000000e+00> : vector<64x128xf32>
    %172 = tpu.matmul %170, %171, %cst_38 {dimension_numbers = #tpu.dot_dimension_numbers<[1], [0], [0], [1], [0, 0, 1, 1], [], []>} : vector<64x32xbf16>, vector<32x128xbf16>, vector<64x128xf32> -> vector<64x128xf32>
    %c0_39 = arith.constant 0 : index
    %c0_40 = arith.constant 0 : index
    %173 = vector.load %arg6[%c0_39, %c0_40] : memref<1x128xf32, #tpu.memory_space<vmem>>, vector<1x128xf32>
    %174 = vector.broadcast %173 : vector<1x128xf32> to vector<64x128xf32>
    %175 = arith.addf %172, %174 : vector<64x128xf32>
    %c0_41 = arith.constant 0 : index
    %c0_42 = arith.constant 0 : index
    %176 = vector.load %arg5[%c0_41, %c0_42] : memref<32x128xbf16, #tpu.memory_space<vmem>>, vector<32x128xbf16>
    %cst_43 = arith.constant 0.000000e+00 : f32
    %177 = vector.broadcast %cst_43 : f32 to vector<8x32xf32>
    %cst_44 = arith.constant 0.000000e+00 : f32
    %178 = vector.broadcast %cst_44 : f32 to vector<8x32xf32>
    %179 = vector.extract_strided_slice %175 {offsets = [0, 0], sizes = [8, 128], strides = [1, 1]} : vector<64x128xf32> to vector<8x128xf32>
    %180 = arith.truncf %177 : vector<8x32xf32> to vector<8x32xbf16>
    %cst_45 = arith.constant dense<0.000000e+00> : vector<8x128xf32>
    %181 = tpu.matmul %180, %176, %cst_45 {dimension_numbers = #tpu.dot_dimension_numbers<[1], [0], [0], [1], [0, 0, 1, 1], [], []>} : vector<8x32xbf16>, vector<32x128xbf16>, vector<8x128xf32> -> vector<8x128xf32>
    %182 = arith.addf %179, %181 : vector<8x128xf32>
    %183 = arith.negf %182 : vector<8x128xf32>
    %184 = math.exp %183 : vector<8x128xf32>
    %cst_46 = arith.constant 1.000000e+00 : f32
    %185 = vector.broadcast %cst_46 : f32 to vector<8x128xf32>
    %186 = arith.addf %185, %184 : vector<8x128xf32>
    %187 = arith.divf %185, %186 : vector<8x128xf32>
    %188 = math.tanh %182 : vector<8x128xf32>
    %189 = vector.extract_strided_slice %187 {offsets = [0, 0], sizes = [8, 32], strides = [1, 1]} : vector<8x128xf32> to vector<8x32xf32>
    %190 = vector.extract_strided_slice %187 {offsets = [0, 32], sizes = [8, 32], strides = [1, 1]} : vector<8x128xf32> to vector<8x32xf32>
    %191 = vector.extract_strided_slice %188 {offsets = [0, 64], sizes = [8, 32], strides = [1, 1]} : vector<8x128xf32> to vector<8x32xf32>
    %192 = vector.extract_strided_slice %187 {offsets = [0, 96], sizes = [8, 32], strides = [1, 1]} : vector<8x128xf32> to vector<8x32xf32>
    %193 = arith.mulf %190, %178 : vector<8x32xf32>
    %194 = arith.mulf %189, %191 : vector<8x32xf32>
    %195 = arith.addf %193, %194 : vector<8x32xf32>
    %196 = math.tanh %195 : vector<8x32xf32>
    %197 = arith.mulf %192, %196 : vector<8x32xf32>
    %c0_47 = arith.constant 0 : index
    %c0_48 = arith.constant 0 : index
    %198 = vector.load %arg14[%c0_47, %c0_48] : memref<64x32xf32, #tpu.memory_space<vmem>>, vector<8x32xf32>
    tpu.vector_store %arg14[%c0_47, %c0_48], %197 {strides = array<i32>} : memref<64x32xf32, #tpu.memory_space<vmem>>, vector<8x32xf32>,
    %199 = vector.extract_strided_slice %175 {offsets = [8, 0], sizes = [8, 128], strides = [1, 1]} : vector<64x128xf32> to vector<8x128xf32>
    %200 = arith.truncf %197 : vector<8x32xf32> to vector<8x32xbf16>
    %cst_49 = arith.constant dense<0.000000e+00> : vector<8x128xf32>
    %201 = tpu.matmul %200, %176, %cst_49 {dimension_numbers = #tpu.dot_dimension_numbers<[1], [0], [0], [1], [0, 0, 1, 1], [], []>} : vector<8x32xbf16>, vector<32x128xbf16>, vector<8x128xf32> -> vector<8x128xf32>
    %202 = arith.addf %199, %201 : vector<8x128xf32>
    %203 = arith.negf %202 : vector<8x128xf32>
    %204 = math.exp %203 : vector<8x128xf32>
    %cst_50 = arith.constant 1.000000e+00 : f32
    %205 = vector.broadcast %cst_50 : f32 to vector<8x128xf32>
    %206 = arith.addf %205, %204 : vector<8x128xf32>
    %207 = arith.divf %205, %206 : vector<8x128xf32>
    %208 = math.tanh %202 : vector<8x128xf32>
    %209 = vector.extract_strided_slice %207 {offsets = [0, 0], sizes = [8, 32], strides = [1, 1]} : vector<8x128xf32> to vector<8x32xf32>
    %210 = vector.extract_strided_slice %207 {offsets = [0, 32], sizes = [8, 32], strides = [1, 1]} : vector<8x128xf32> to vector<8x32xf32>
    %211 = vector.extract_strided_slice %208 {offsets = [0, 64], sizes = [8, 32], strides = [1, 1]} : vector<8x128xf32> to vector<8x32xf32>
    %212 = vector.extract_strided_slice %207 {offsets = [0, 96], sizes = [8, 32], strides = [1, 1]} : vector<8x128xf32> to vector<8x32xf32>
    %213 = arith.mulf %210, %195 : vector<8x32xf32>
    %214 = arith.mulf %209, %211 : vector<8x32xf32>
    %215 = arith.addf %213, %214 : vector<8x32xf32>
    %216 = math.tanh %215 : vector<8x32xf32>
    %217 = arith.mulf %212, %216 : vector<8x32xf32>
    %c8_51 = arith.constant 8 : index
    %c0_52 = arith.constant 0 : index
    %218 = vector.load %arg14[%c8_51, %c0_52] : memref<64x32xf32, #tpu.memory_space<vmem>>, vector<8x32xf32>
    tpu.vector_store %arg14[%c8_51, %c0_52], %217 {strides = array<i32>} : memref<64x32xf32, #tpu.memory_space<vmem>>, vector<8x32xf32>,
    %219 = vector.extract_strided_slice %175 {offsets = [16, 0], sizes = [8, 128], strides = [1, 1]} : vector<64x128xf32> to vector<8x128xf32>
    %220 = arith.truncf %217 : vector<8x32xf32> to vector<8x32xbf16>
    %cst_53 = arith.constant dense<0.000000e+00> : vector<8x128xf32>
    %221 = tpu.matmul %220, %176, %cst_53 {dimension_numbers = #tpu.dot_dimension_numbers<[1], [0], [0], [1], [0, 0, 1, 1], [], []>} : vector<8x32xbf16>, vector<32x128xbf16>, vector<8x128xf32> -> vector<8x128xf32>
    %222 = arith.addf %219, %221 : vector<8x128xf32>
    %223 = arith.negf %222 : vector<8x128xf32>
    %224 = math.exp %223 : vector<8x128xf32>
    %cst_54 = arith.constant 1.000000e+00 : f32
    %225 = vector.broadcast %cst_54 : f32 to vector<8x128xf32>
    %226 = arith.addf %225, %224 : vector<8x128xf32>
    %227 = arith.divf %225, %226 : vector<8x128xf32>
    %228 = math.tanh %222 : vector<8x128xf32>
    %229 = vector.extract_strided_slice %227 {offsets = [0, 0], sizes = [8, 32], strides = [1, 1]} : vector<8x128xf32> to vector<8x32xf32>
    %230 = vector.extract_strided_slice %227 {offsets = [0, 32], sizes = [8, 32], strides = [1, 1]} : vector<8x128xf32> to vector<8x32xf32>
    %231 = vector.extract_strided_slice %228 {offsets = [0, 64], sizes = [8, 32], strides = [1, 1]} : vector<8x128xf32> to vector<8x32xf32>
    %232 = vector.extract_strided_slice %227 {offsets = [0, 96], sizes = [8, 32], strides = [1, 1]} : vector<8x128xf32> to vector<8x32xf32>
    %233 = arith.mulf %230, %215 : vector<8x32xf32>
    %234 = arith.mulf %229, %231 : vector<8x32xf32>
    %235 = arith.addf %233, %234 : vector<8x32xf32>
    %236 = math.tanh %235 : vector<8x32xf32>
    %237 = arith.mulf %232, %236 : vector<8x32xf32>
    %c16_55 = arith.constant 16 : index
    %c0_56 = arith.constant 0 : index
    %238 = vector.load %arg14[%c16_55, %c0_56] : memref<64x32xf32, #tpu.memory_space<vmem>>, vector<8x32xf32>
    tpu.vector_store %arg14[%c16_55, %c0_56], %237 {strides = array<i32>} : memref<64x32xf32, #tpu.memory_space<vmem>>, vector<8x32xf32>,
    %239 = vector.extract_strided_slice %175 {offsets = [24, 0], sizes = [8, 128], strides = [1, 1]} : vector<64x128xf32> to vector<8x128xf32>
    %240 = arith.truncf %237 : vector<8x32xf32> to vector<8x32xbf16>
    %cst_57 = arith.constant dense<0.000000e+00> : vector<8x128xf32>
    %241 = tpu.matmul %240, %176, %cst_57 {dimension_numbers = #tpu.dot_dimension_numbers<[1], [0], [0], [1], [0, 0, 1, 1], [], []>} : vector<8x32xbf16>, vector<32x128xbf16>, vector<8x128xf32> -> vector<8x128xf32>
    %242 = arith.addf %239, %241 : vector<8x128xf32>
    %243 = arith.negf %242 : vector<8x128xf32>
    %244 = math.exp %243 : vector<8x128xf32>
    %cst_58 = arith.constant 1.000000e+00 : f32
    %245 = vector.broadcast %cst_58 : f32 to vector<8x128xf32>
    %246 = arith.addf %245, %244 : vector<8x128xf32>
    %247 = arith.divf %245, %246 : vector<8x128xf32>
    %248 = math.tanh %242 : vector<8x128xf32>
    %249 = vector.extract_strided_slice %247 {offsets = [0, 0], sizes = [8, 32], strides = [1, 1]} : vector<8x128xf32> to vector<8x32xf32>
    %250 = vector.extract_strided_slice %247 {offsets = [0, 32], sizes = [8, 32], strides = [1, 1]} : vector<8x128xf32> to vector<8x32xf32>
    %251 = vector.extract_strided_slice %248 {offsets = [0, 64], sizes = [8, 32], strides = [1, 1]} : vector<8x128xf32> to vector<8x32xf32>
    %252 = vector.extract_strided_slice %247 {offsets = [0, 96], sizes = [8, 32], strides = [1, 1]} : vector<8x128xf32> to vector<8x32xf32>
    %253 = arith.mulf %250, %235 : vector<8x32xf32>
    %254 = arith.mulf %249, %251 : vector<8x32xf32>
    %255 = arith.addf %253, %254 : vector<8x32xf32>
    %256 = math.tanh %255 : vector<8x32xf32>
    %257 = arith.mulf %252, %256 : vector<8x32xf32>
    %c24_59 = arith.constant 24 : index
    %c0_60 = arith.constant 0 : index
    %258 = vector.load %arg14[%c24_59, %c0_60] : memref<64x32xf32, #tpu.memory_space<vmem>>, vector<8x32xf32>
    tpu.vector_store %arg14[%c24_59, %c0_60], %257 {strides = array<i32>} : memref<64x32xf32, #tpu.memory_space<vmem>>, vector<8x32xf32>,
    %259 = vector.extract_strided_slice %175 {offsets = [32, 0], sizes = [8, 128], strides = [1, 1]} : vector<64x128xf32> to vector<8x128xf32>
    %260 = arith.truncf %257 : vector<8x32xf32> to vector<8x32xbf16>
    %cst_61 = arith.constant dense<0.000000e+00> : vector<8x128xf32>
    %261 = tpu.matmul %260, %176, %cst_61 {dimension_numbers = #tpu.dot_dimension_numbers<[1], [0], [0], [1], [0, 0, 1, 1], [], []>} : vector<8x32xbf16>, vector<32x128xbf16>, vector<8x128xf32> -> vector<8x128xf32>
    %262 = arith.addf %259, %261 : vector<8x128xf32>
    %263 = arith.negf %262 : vector<8x128xf32>
    %264 = math.exp %263 : vector<8x128xf32>
    %cst_62 = arith.constant 1.000000e+00 : f32
    %265 = vector.broadcast %cst_62 : f32 to vector<8x128xf32>
    %266 = arith.addf %265, %264 : vector<8x128xf32>
    %267 = arith.divf %265, %266 : vector<8x128xf32>
    %268 = math.tanh %262 : vector<8x128xf32>
    %269 = vector.extract_strided_slice %267 {offsets = [0, 0], sizes = [8, 32], strides = [1, 1]} : vector<8x128xf32> to vector<8x32xf32>
    %270 = vector.extract_strided_slice %267 {offsets = [0, 32], sizes = [8, 32], strides = [1, 1]} : vector<8x128xf32> to vector<8x32xf32>
    %271 = vector.extract_strided_slice %268 {offsets = [0, 64], sizes = [8, 32], strides = [1, 1]} : vector<8x128xf32> to vector<8x32xf32>
    %272 = vector.extract_strided_slice %267 {offsets = [0, 96], sizes = [8, 32], strides = [1, 1]} : vector<8x128xf32> to vector<8x32xf32>
    %273 = arith.mulf %270, %255 : vector<8x32xf32>
    %274 = arith.mulf %269, %271 : vector<8x32xf32>
    %275 = arith.addf %273, %274 : vector<8x32xf32>
    %276 = math.tanh %275 : vector<8x32xf32>
    %277 = arith.mulf %272, %276 : vector<8x32xf32>
    %c32_63 = arith.constant 32 : index
    %c0_64 = arith.constant 0 : index
    %278 = vector.load %arg14[%c32_63, %c0_64] : memref<64x32xf32, #tpu.memory_space<vmem>>, vector<8x32xf32>
    tpu.vector_store %arg14[%c32_63, %c0_64], %277 {strides = array<i32>} : memref<64x32xf32, #tpu.memory_space<vmem>>, vector<8x32xf32>,
    %279 = vector.extract_strided_slice %175 {offsets = [40, 0], sizes = [8, 128], strides = [1, 1]} : vector<64x128xf32> to vector<8x128xf32>
    %280 = arith.truncf %277 : vector<8x32xf32> to vector<8x32xbf16>
    %cst_65 = arith.constant dense<0.000000e+00> : vector<8x128xf32>
    %281 = tpu.matmul %280, %176, %cst_65 {dimension_numbers = #tpu.dot_dimension_numbers<[1], [0], [0], [1], [0, 0, 1, 1], [], []>} : vector<8x32xbf16>, vector<32x128xbf16>, vector<8x128xf32> -> vector<8x128xf32>
    %282 = arith.addf %279, %281 : vector<8x128xf32>
    %283 = arith.negf %282 : vector<8x128xf32>
    %284 = math.exp %283 : vector<8x128xf32>
    %cst_66 = arith.constant 1.000000e+00 : f32
    %285 = vector.broadcast %cst_66 : f32 to vector<8x128xf32>
    %286 = arith.addf %285, %284 : vector<8x128xf32>
    %287 = arith.divf %285, %286 : vector<8x128xf32>
    %288 = math.tanh %282 : vector<8x128xf32>
    %289 = vector.extract_strided_slice %287 {offsets = [0, 0], sizes = [8, 32], strides = [1, 1]} : vector<8x128xf32> to vector<8x32xf32>
    %290 = vector.extract_strided_slice %287 {offsets = [0, 32], sizes = [8, 32], strides = [1, 1]} : vector<8x128xf32> to vector<8x32xf32>
    %291 = vector.extract_strided_slice %288 {offsets = [0, 64], sizes = [8, 32], strides = [1, 1]} : vector<8x128xf32> to vector<8x32xf32>
    %292 = vector.extract_strided_slice %287 {offsets = [0, 96], sizes = [8, 32], strides = [1, 1]} : vector<8x128xf32> to vector<8x32xf32>
    %293 = arith.mulf %290, %275 : vector<8x32xf32>
    %294 = arith.mulf %289, %291 : vector<8x32xf32>
    %295 = arith.addf %293, %294 : vector<8x32xf32>
    %296 = math.tanh %295 : vector<8x32xf32>
    %297 = arith.mulf %292, %296 : vector<8x32xf32>
    %c40_67 = arith.constant 40 : index
    %c0_68 = arith.constant 0 : index
    %298 = vector.load %arg14[%c40_67, %c0_68] : memref<64x32xf32, #tpu.memory_space<vmem>>, vector<8x32xf32>
    tpu.vector_store %arg14[%c40_67, %c0_68], %297 {strides = array<i32>} : memref<64x32xf32, #tpu.memory_space<vmem>>, vector<8x32xf32>,
    %299 = vector.extract_strided_slice %175 {offsets = [48, 0], sizes = [8, 128], strides = [1, 1]} : vector<64x128xf32> to vector<8x128xf32>
    %300 = arith.truncf %297 : vector<8x32xf32> to vector<8x32xbf16>
    %cst_69 = arith.constant dense<0.000000e+00> : vector<8x128xf32>
    %301 = tpu.matmul %300, %176, %cst_69 {dimension_numbers = #tpu.dot_dimension_numbers<[1], [0], [0], [1], [0, 0, 1, 1], [], []>} : vector<8x32xbf16>, vector<32x128xbf16>, vector<8x128xf32> -> vector<8x128xf32>
    %302 = arith.addf %299, %301 : vector<8x128xf32>
    %303 = arith.negf %302 : vector<8x128xf32>
    %304 = math.exp %303 : vector<8x128xf32>
    %cst_70 = arith.constant 1.000000e+00 : f32
    %305 = vector.broadcast %cst_70 : f32 to vector<8x128xf32>
    %306 = arith.addf %305, %304 : vector<8x128xf32>
    %307 = arith.divf %305, %306 : vector<8x128xf32>
    %308 = math.tanh %302 : vector<8x128xf32>
    %309 = vector.extract_strided_slice %307 {offsets = [0, 0], sizes = [8, 32], strides = [1, 1]} : vector<8x128xf32> to vector<8x32xf32>
    %310 = vector.extract_strided_slice %307 {offsets = [0, 32], sizes = [8, 32], strides = [1, 1]} : vector<8x128xf32> to vector<8x32xf32>
    %311 = vector.extract_strided_slice %308 {offsets = [0, 64], sizes = [8, 32], strides = [1, 1]} : vector<8x128xf32> to vector<8x32xf32>
    %312 = vector.extract_strided_slice %307 {offsets = [0, 96], sizes = [8, 32], strides = [1, 1]} : vector<8x128xf32> to vector<8x32xf32>
    %313 = arith.mulf %310, %295 : vector<8x32xf32>
    %314 = arith.mulf %309, %311 : vector<8x32xf32>
    %315 = arith.addf %313, %314 : vector<8x32xf32>
    %316 = math.tanh %315 : vector<8x32xf32>
    %317 = arith.mulf %312, %316 : vector<8x32xf32>
    %c48_71 = arith.constant 48 : index
    %c0_72 = arith.constant 0 : index
    %318 = vector.load %arg14[%c48_71, %c0_72] : memref<64x32xf32, #tpu.memory_space<vmem>>, vector<8x32xf32>
    tpu.vector_store %arg14[%c48_71, %c0_72], %317 {strides = array<i32>} : memref<64x32xf32, #tpu.memory_space<vmem>>, vector<8x32xf32>,
    %319 = vector.extract_strided_slice %175 {offsets = [56, 0], sizes = [8, 128], strides = [1, 1]} : vector<64x128xf32> to vector<8x128xf32>
    %320 = arith.truncf %317 : vector<8x32xf32> to vector<8x32xbf16>
    %cst_73 = arith.constant dense<0.000000e+00> : vector<8x128xf32>
    %321 = tpu.matmul %320, %176, %cst_73 {dimension_numbers = #tpu.dot_dimension_numbers<[1], [0], [0], [1], [0, 0, 1, 1], [], []>} : vector<8x32xbf16>, vector<32x128xbf16>, vector<8x128xf32> -> vector<8x128xf32>
    %322 = arith.addf %319, %321 : vector<8x128xf32>
    %323 = arith.negf %322 : vector<8x128xf32>
    %324 = math.exp %323 : vector<8x128xf32>
    %cst_74 = arith.constant 1.000000e+00 : f32
    %325 = vector.broadcast %cst_74 : f32 to vector<8x128xf32>
    %326 = arith.addf %325, %324 : vector<8x128xf32>
    %327 = arith.divf %325, %326 : vector<8x128xf32>
    %328 = math.tanh %322 : vector<8x128xf32>
    %329 = vector.extract_strided_slice %327 {offsets = [0, 0], sizes = [8, 32], strides = [1, 1]} : vector<8x128xf32> to vector<8x32xf32>
    %330 = vector.extract_strided_slice %327 {offsets = [0, 32], sizes = [8, 32], strides = [1, 1]} : vector<8x128xf32> to vector<8x32xf32>
    %331 = vector.extract_strided_slice %328 {offsets = [0, 64], sizes = [8, 32], strides = [1, 1]} : vector<8x128xf32> to vector<8x32xf32>
    %332 = vector.extract_strided_slice %327 {offsets = [0, 96], sizes = [8, 32], strides = [1, 1]} : vector<8x128xf32> to vector<8x32xf32>
    %333 = arith.mulf %330, %315 : vector<8x32xf32>
    %334 = arith.mulf %329, %331 : vector<8x32xf32>
    %335 = arith.addf %333, %334 : vector<8x32xf32>
    %336 = math.tanh %335 : vector<8x32xf32>
    %337 = arith.mulf %332, %336 : vector<8x32xf32>
    %c56_75 = arith.constant 56 : index
    %c0_76 = arith.constant 0 : index
    %338 = vector.load %arg14[%c56_75, %c0_76] : memref<64x32xf32, #tpu.memory_space<vmem>>, vector<8x32xf32>
    tpu.vector_store %arg14[%c56_75, %c0_76], %337 {strides = array<i32>} : memref<64x32xf32, #tpu.memory_space<vmem>>, vector<8x32xf32>,
    %c0_77 = arith.constant 0 : index
    %c0_78 = arith.constant 0 : index
    %339 = vector.load %arg14[%c0_77, %c0_78] : memref<64x32xf32, #tpu.memory_space<vmem>>, vector<64x32xf32>
    %cst_79 = arith.constant dense<0.000000e+00> : vector<64x8xf32>
    %340 = tpu.matmul %339, %337, %cst_79 {dimension_numbers = #tpu.dot_dimension_numbers<[1], [1], [0], [0], [0, 0, 1, 0], [], []>} : vector<64x32xf32>, vector<8x32xf32>, vector<64x8xf32> -> vector<64x8xf32>
    %341 = tpu.iota {dimensions = array<i32: 0>} : vector<64x8xi32>
    %342 = tpu.iota {dimensions = array<i32: 1>} : vector<64x8xi32>
    %c8_i32 = arith.constant 8 : i32
    %c0_i32 = arith.constant 0 : i32
    %343 = arith.cmpi eq, %c8_i32, %c0_i32 : i32
    %c1_i32 = arith.constant 1 : i32
    %344 = arith.select %343, %c1_i32, %c8_i32 : i32
    %345 = vector.broadcast %344 : i32 to vector<64x8xi32>
    %346 = arith.remsi %341, %345 : vector<64x8xi32>
    %c0_i32_80 = arith.constant 0 : i32
    %347 = vector.broadcast %c0_i32_80 : i32 to vector<64x8xi32>
    %348 = arith.cmpi ne, %346, %347 : vector<64x8xi32>
    %c0_i32_81 = arith.constant 0 : i32
    %349 = vector.broadcast %c0_i32_81 : i32 to vector<64x8xi32>
    %350 = arith.cmpi slt, %346, %349 : vector<64x8xi32>
    %c0_i32_82 = arith.constant 0 : i32
    %351 = arith.cmpi slt, %344, %c0_i32_82 : i32
    %352 = vector.broadcast %351 : i1 to vector<64x8xi1>
    %353 = vector.broadcast %352 : vector<64x8xi1> to vector<64x8xi1>
    %354 = arith.xori %350, %353 : vector<64x8xi1>
    %355 = arith.andi %354, %348 : vector<64x8xi1>
    %356 = vector.broadcast %344 : i32 to vector<64x8xi32>
    %357 = arith.addi %346, %356 : vector<64x8xi32>
    %358 = arith.select %355, %357, %346 : vector<64x8xi1>, vector<64x8xi32>
    %359 = arith.cmpi eq, %358, %342 : vector<64x8xi32>
    %cst_83 = arith.constant 0xFF800000 : f32
    %360 = vector.broadcast %cst_83 : f32 to vector<64x8xf32>
    %361 = arith.select %359, %340, %360 : vector<64x8xi1>, vector<64x8xf32>
    %cst_84 = arith.constant dense<0xFF800000> : vector<8xf32>
    %362 = vector.multi_reduction <maximumf>, %361, %cst_84 [0] : vector<64x8xf32> to vector<8xf32>
    %363 = vector.shape_cast %362 : vector<8xf32> to vector<1x8xf32>
    %364 = vector.broadcast %363 : vector<1x8xf32> to vector<64x8xf32>
    %365 = arith.subf %361, %364 : vector<64x8xf32>
    %366 = math.exp %365 : vector<64x8xf32>
    %cst_85 = arith.constant dense<0.000000e+00> : vector<8xf32>
    %367 = vector.multi_reduction <add>, %366, %cst_85 [0] : vector<64x8xf32> to vector<8xf32>
    %368 = vector.shape_cast %367 : vector<8xf32> to vector<1x8xf32>
    %369 = tpu.reciprocal %368 {approx = true} : vector<1x8xf32> -> vector<1x8xf32>
    %370 = vector.broadcast %369 : vector<1x8xf32> to vector<64x8xf32>
    %371 = arith.mulf %366, %370 : vector<64x8xf32>
    %cst_86 = arith.constant dense<0.000000e+00> : vector<8x32xf32>
    %372 = tpu.matmul %371, %339, %cst_86 {dimension_numbers = #tpu.dot_dimension_numbers<[0], [0], [1], [1], [0, 1, 1, 1], [], []>} : vector<64x8xf32>, vector<64x32xf32>, vector<8x32xf32> -> vector<8x32xf32>
    %373 = arith.truncf %337 : vector<8x32xf32> to vector<8x32xbf16>
    %c0_87 = arith.constant 0 : index
    %c0_88 = arith.constant 0 : index
    %374 = vector.load %arg7[%c0_87, %c0_88] : memref<32x32xbf16, #tpu.memory_space<vmem>>, vector<32x32xbf16>
    %cst_89 = arith.constant dense<0.000000e+00> : vector<8x32xf32>
    %375 = tpu.matmul %373, %374, %cst_89 {dimension_numbers = #tpu.dot_dimension_numbers<[1], [0], [0], [1], [0, 0, 1, 1], [], []>} : vector<8x32xbf16>, vector<32x32xbf16>, vector<8x32xf32> -> vector<8x32xf32>
    %376 = arith.truncf %372 : vector<8x32xf32> to vector<8x32xbf16>
    %c0_90 = arith.constant 0 : index
    %c0_91 = arith.constant 0 : index
    %377 = vector.load %arg8[%c0_90, %c0_91] : memref<32x32xbf16, #tpu.memory_space<vmem>>, vector<32x32xbf16>
    %cst_92 = arith.constant dense<0.000000e+00> : vector<8x32xf32>
    %378 = tpu.matmul %376, %377, %cst_92 {dimension_numbers = #tpu.dot_dimension_numbers<[1], [0], [0], [1], [0, 0, 1, 1], [], []>} : vector<8x32xbf16>, vector<32x32xbf16>, vector<8x32xf32> -> vector<8x32xf32>
    %379 = arith.addf %375, %378 : vector<8x32xf32>
    %c0_93 = arith.constant 0 : index
    %c0_94 = arith.constant 0 : index
    %380 = vector.load %arg9[%c0_93, %c0_94] : memref<1x32xf32, #tpu.memory_space<vmem>>, vector<1x32xf32>
    %381 = vector.broadcast %380 : vector<1x32xf32> to vector<8x32xf32>
    %382 = arith.addf %379, %381 : vector<8x32xf32>
    %383 = math.tanh %382 : vector<8x32xf32>
    %384 = arith.truncf %383 : vector<8x32xf32> to vector<8x32xbf16>
    %c0_95 = arith.constant 0 : index
    %c0_96 = arith.constant 0 : index
    %385 = vector.load %arg10[%c0_95, %c0_96] : memref<32x1xbf16, #tpu.memory_space<vmem>>, vector<32x1xbf16>
    %cst_97 = arith.constant dense<0.000000e+00> : vector<8x1xf32>
    %386 = tpu.matmul %384, %385, %cst_97 {dimension_numbers = #tpu.dot_dimension_numbers<[1], [0], [0], [1], [0, 0, 1, 1], [], []>} : vector<8x32xbf16>, vector<32x1xbf16>, vector<8x1xf32> -> vector<8x1xf32>
    %c0_98 = arith.constant 0 : index
    %c0_99 = arith.constant 0 : index
    %387 = vector.load %arg11[%c0_98, %c0_99] : memref<1x1xf32, #tpu.memory_space<vmem>>, vector<1x1xf32>
    %388 = vector.broadcast %387 : vector<1x1xf32> to vector<8x1xf32>
    %389 = arith.addf %386, %388 : vector<8x1xf32>
    %c0_100 = arith.constant 0 : index
    %c0_101 = arith.constant 0 : index
    %390 = vector.load %arg12[%c0_100, %c0_101] : memref<8x1xf32, #tpu.memory_space<vmem>>, vector<8x1xf32>
    tpu.vector_store %arg12[%c0_100, %c0_101], %389 {strides = array<i32>} : memref<8x1xf32, #tpu.memory_space<vmem>>, vector<8x1xf32>,
    return
  }
}

</mosaic_0001>

<bundles_post_ra>
// kernel: tpu_custom_call.1
= control target key start
LH: loop header
LB: loop body
LE: loop exit
PB: predicated region body
PF: predicated region fallthrough
CT: control target
= control target key end

     0   :  { %s3351_s0 = inlined_call_operand.vmem [shape: bf16[64,4], index: 0, kind: input, shape index: {}]   ;;  %s3352_s1 = inlined_call_operand.hbm [shape: bf16[4,128], index: 1, kind: input, shape index: {}]   ;;  %s3353_s2 = inlined_call_operand.vmem [shape: bf16[32,128], index: 2, kind: input, shape index: {}]   ;;  %s3354_s3 = inlined_call_operand.vmem [shape: f32[1,128], index: 3, kind: input, shape index: {}]   ;;  %s3355_s4 = inlined_call_operand.vmem [shape: bf16[32,128], index: 4, kind: input, shape index: {}]   ;;  %s3356_s5 = inlined_call_operand.vmem [shape: bf16[32,128], index: 5, kind: input, shape index: {}]   ;;  %s3357_s6 = inlined_call_operand.hbm [shape: f32[1,128], index: 6, kind: input, shape index: {}]   ;;  %s3358_s7 = inlined_call_operand.vmem [shape: bf16[32,32], index: 7, kind: input, shape index: {}]   ;;  %s3359_s8 = inlined_call_operand.vmem [shape: bf16[32,32], index: 8, kind: input, shape index: {}]   ;;  %s3360_s9 = inlined_call_operand.vmem [shape: f32[1,32], index: 9, kind: input, shape index: {}]   ;;  %s3361_s10 = inlined_call_operand.vmem [shape: bf16[32,1], index: 10, kind: input, shape index: {}]   ;;  %s3362_s11 = inlined_call_operand.<no memory space> [shape: f32[1,1], index: 11, kind: input, shape index: {}]   ;;  %s3363_s12 = inlined_call_operand.vmem [shape: f32[8,1], index: 12, kind: output, shape index: {}]  }
   0x1   :  { %v17_v0 = vstv %s3362_s11 }
   0x2   :  { %18 = vst [vmem:[#allocation4] sm:$0x1] %v17_v0 }
   0x3   :  { %19 = vsyncpa [#allocation6], 0 }
   0x4   :  { %20 = vsyncpa [#allocation8], 0  ;;  %s2800_s23 = smov [#allocation5]   ;;  %s2801_s25 = smov [#allocation7]  }
   0x5   :  { %s29_s24 = sshll.u32 %s2800_s23, 4  ;;  %s47_s26 = sshll.u32 %s2801_s25, 4  ;;  %s30_s24 = int_to_ptr.vmem [resolvable:$true] %s29_s24  ;;  %s48_s26 = int_to_ptr.vmem [resolvable:$true] %s47_s26 }
   0x6   :  { %s2752_s29 = scalar_lea.hbm %s3352_s1, 32 }
   0x7   :  { %p2753_p0 = scmp.ne.s32.totalorder %s3352_s1, %s2752_s29  ;;  %p2756_p1 = scmp.lt.u32.totalorder %s2752_s29, %s3352_s1 }
   0x9   :  { %p2758_p2 = pnand %p2756_p1, %p2753_p0 }
   0xb   :  { %2761 = shalt.err (!%p2758_p2)
}
   0xc   :  { %s2762_s11 = scalar_lea.vmem %s30_s24, 32  ;;  %p2767_p4 = scmp.lt.s32.totalorder %s30_s24, %s30_s24 }
   0xd   :  { %p2763_p3 = scmp.ne.s32.totalorder %s30_s24, %s2762_s11  ;;  %p2768_p5 = scmp.lt.s32.totalorder %s2762_s11, %s2762_s11 }
   0xf   :  { %p2769_p6 = por %p2768_p5, %p2767_p4 }
  0x11   :  { %p2770_p7 = pnand %p2769_p6, %p2763_p3 }
  0x13   :  { %2773 = shalt.err (!%p2770_p7)
}
  0x14   :  { %32 = dma.hbm_to_vmem [thread:$0]  %s3352_s1, 32, %s30_s24, [#allocation6]  }
  0x15   :  { %s2774_s20 = scalar_lea.hbm %s3357_s6, 16 }
  0x16   :  { %p2775_p8 = scmp.ne.s32.totalorder %s3357_s6, %s2774_s20  ;;  %p2778_p9 = scmp.lt.u32.totalorder %s2774_s20, %s3357_s6 }
  0x18   :  { %p2780_p10 = pnand %p2778_p9, %p2775_p8 }
  0x1a   :  { %2783 = shalt.err (!%p2780_p10)
}
  0x1b   :  { %s2784_s27 = scalar_lea.vmem %s48_s26, 16  ;;  %s2788_s28 = scalar_lea.vmem %s48_s26, 32 }
  0x1c   :  { %p2785_p11 = scmp.ne.s32.totalorder %s48_s26, %s2784_s27  ;;  %p2789_p12 = scmp.lt.s32.totalorder %s48_s26, %s48_s26 }
  0x1d   :  { %p2790_p13 = scmp.lt.s32.totalorder %s2788_s28, %s2784_s27 }
  0x1f   :  { %p2791_p0 = por %p2790_p13, %p2789_p12 }
  0x21   :  { %p2792_p1 = pnand %p2791_p0, %p2785_p11 }
  0x23   :  { %2795 = shalt.err (!%p2792_p1)
}
  0x24   :  { %50 = dma.hbm_to_vmem [thread:$0]  %s3357_s6, 16, %s48_s26, [#allocation8]  }
  0x25   :  { %2796 = dma.done.wait [#allocation6], 32  }
  0x26   :  { %2797 = vsyncadd [#allocation6], 4294967264 }
  0x27   :  { %2798 = dma.done.wait [#allocation8], 16  }
  0x28   :  { %2799 = vsyncadd [#allocation8], 4294967280  ;;  %v2802_v1 = vmov 0.0   ;;  %vm2803_vm0 = vmmov 0   ;;  %vm117_vm1 = vcmask 1041408   ;;  %vm104_vm2 = vcmask 31744  }
  0x29   :  { %2370 = vmatprep.subr.bf16.mxu1 %v2802_v1  ;;  %2374 = vmatprep.mubr.msk.bf16.mxu1 %vm2803_vm0, %v2802_v1  ;;  %v76_v2 = vld [vmem:[#allocation5] sm:$0x3]  ;;  %v2590_v6 = vld [vmem:[%s3351_s0 + $0x8] sm:$0xff]   ;;  %v2804_v8 = vmov 0   ;;  %v2940_v9 = vld [vmem:[%s3354_s3] ss:$0 sm:$0xff] }
  0x2a   :  { %2579 = vmatprep.subr.msk.bf16.mxu0 %vm117_vm1, %v76_v2  ;;  %v119_v3 = vsel %vm117_vm1, %v76_v2, 0  ;;  %v2906_v4 = vld [vmem:[%s3353_s2] sm:$0xff]   ;;  %v2921_v7 = vld [vmem:[%s3353_s2 + $0x8] sm:$0xff]   ;;  %s2805_s17 = smov 64   ;;  %s2806_s3 = smov 32   ;;  %vm202_vm3 = vcmask 261120  }
  0x2b   :  { %2361 = vmatpush3.bf16.msra.mxu0 %v119_v3  ;;  %v2589_v5 = vld [vmem:[%s3351_s0] sm:$0xff]   ;;  %2371 = vmatpush3.bf16.msra.mxu1 %v2906_v4  ;;  %v2592_v51 = vld [vmem:[%s3351_s0 + $0x10] sm:$0xff]   ;;  %v2593_v52 = vld [vmem:[%s3351_s0 + $0x18] sm:$0xff]   ;;  %vm1814_vm7 = vcmask 64512   ;;  %vm1922_vm13 = vcmask 523264   ;;  %vm2195_vm14 = vcmask 7168  }
  0x2c   :  { %2386 = vmatprep.subr.bf16.mxu0 %v2802_v1  ;;  %2362 = vmatprep.mubr.msk.bf16.mxu0 %vm104_vm2, %v2589_v5 }
  0x2d   :  { %2372 = vmatprep.subr.bf16.mxu1 %v2802_v1 }
  0x2e   :  { %2363 = vmatmul.mubr.msk.bf16.vlgmr.msra.gmra.mrb[0].mxu0 %vm104_vm2, %v2590_v6 }
  0x2f   :  { %2387 = vmatpush3.bf16.msra.mxu0 %v2906_v4  ;;  %2373 = vmatpush3.bf16.msra.mxu1 %v2921_v7 }
  0x30   :  { %2388 = vmatprep.subr.bf16.mxu0 %v2802_v1  ;;  %2378 = vmatprep.subr.bf16.mxu1 %v2802_v1 }
  0x31   :  { %2366 = vmatprep.mubr.msk.bf16.mxu0 %vm104_vm2, %v2592_v51 }
  0x32   :  { %2375 = vmatmul.mubr.bf16.vlgmr.msra.gmra.mrb[0].mxu1 %v2804_v8 }
  0x33   :  { %2389 = vmatpush3.bf16.msra.mxu0 %v2921_v7  ;;  %2379 = vmatpush3.bf16.msra.mxu1 %v2906_v4 }
  0x34   :  { %2382 = vmatprep.mubr.msk.bf16.mxu1 %vm2803_vm0, %v2802_v1  ;;  %2380 = vmatprep.subr.bf16.mxu1 %v2802_v1 }
  0x35   :  { %2402 = vmatprep.subr.bf16.mxu0 %v2802_v1 }
  0x36   :  { %2367 = vmatmul.mubr.msk.bf16.gmra.mrb[4].mxu0 %vm104_vm2, %v2593_v52 }
  0x37   :  { %2381 = vmatpush3.bf16.msra.mxu1 %v2921_v7  ;;  %2390 = vmatprep.mubr.msk.bf16.mxu0 %vm2803_vm0, %v2802_v1 }
  0x38   :  { %2394 = vmatprep.subr.bf16.mxu1 %v2802_v1 }
 0x101   :  { %v2942_v10 = vpop.f32.mrb[0].mxu0 }
 0x102   :  { %v155_v11 = vpop.f32.mrb[1].mxu0  ;;  %v164_v62 = vadd.f32 %v2942_v10, %v2940_v9 }
 0x103   :  { %v156_v12 = vadd.f32 %v2940_v9, %v155_v11  ;;  %v2945_v13 = vpop.f32.mrb[2].mxu0 }
 0x104   :  { %v158_v14 = vpop.f32.mrb[3].mxu0 }
 0x105   :  { %v240_v15 = vpop.f32.mrb[0].mxu1  ;;  %v159_v35 = vadd.f32 %v2940_v9, %v158_v14 }
 0x106   :  { %v246_v16 = vadd.f32 %v240_v15, %v156_v12  ;;  %v2376_v17 = vpop.f32.mrb[1].mxu1 }
 0x107   :  { %v243_v18 = vpop.f32.mrb[2].mxu1 }
 0x108   :  { %2604 = vtanh.f32 %v246_v16  ;;  %v2377_v19 = vpop.f32.mrb[3].mxu1  ;;  %v2214_v21 = vmul.f32 -1.442695, %v246_v16 }
 0x109   :  { %v2981_v57 = vpop.f32.mrb[4].mxu0 }
 0x10a   :  { %2606 = vpow2.f32 %v2214_v21  ;;  %v2983_v58 = vpop.f32.mrb[5].mxu0 }
 0x10b   :  { %v2985_v59 = vpop.f32.mrb[6].mxu0 }
 0x10c   :  { %v2987_v60 = vpop.f32.mrb[7].mxu0 }
 0x112   :  { %v2605_v20 = vpop.eup %2604 }
 0x113   :  { %256 = vrot.lane.b32.xlu0 %v2605_v20, %s2805_s17 }
 0x114   :  { %v2607_v22 = vpop.eup %2606 }
 0x115   :  { %v250_v23 = vadd.f32 1.0, %v2607_v22 }
 0x117   :  { %2608 = vrcp.f32 %v250_v23 }
 0x121   :  { %v2609_v24 = vpop.eup %2608 }
 0x122   :  { %v254_v27 = vmul.f32 0.0, %v2609_v24 }
 0x185   :  { %v257_v25 = vpop.permute.xlu0 %256 }
 0x186   :  { %v259_v26 = vmul.f32 %v2609_v24, %v257_v25  ;;  %v167_v25 = vadd.f32 %v2945_v13, %v2940_v9 }
 0x188   :  { %261 = vrot.lane.b32.xlu0 %v259_v26, %s2806_s3 }
 0x1fa   :  { %v262_v28 = vpop.permute.xlu0 %261 }
 0x1fb   :  { %v264_v29 = vadd.f32 %v262_v28, %v254_v27 }
 0x1fd   :  { %2610 = vtanh.f32 %v264_v29 }
 0x207   :  { %v2611_v30 = vpop.eup %2610 }
 0x208   :  { %267 = vrot.lane.b32.xlu1 %v2611_v30, %s2805_s17 }
 0x27a   :  { %v268_v31 = vpop.permute.xlu1 %267 }
 0x27b   :  { %v2950_v32 = vmul.f32 %v2609_v24, %v268_v31 }
 0x27d   :  { %v276_v33 = vpack.c.bf16 %v2950_v32, %v2950_v32 }
 0x27f   :  { %278 = vrot.lane.b32.xlu1 %v276_v33, %s2806_s3 }
 0x2f1   :  { %v279_v34 = vpop.permute.xlu1 %278 }
 0x2f2   :  { %2383 = vmatmul.mubr.msk.bf16.vlgmr.msra.gmra.mrb[4].mxu1 %vm202_vm3, %v279_v34 }
 0x2f3   :  { %2395 = vmatpush3.bf16.msra.mxu1 %v2906_v4  ;;  %2398 = vmatprep.mubr.msk.bf16.mxu1 %vm2803_vm0, %v2802_v1 }
 0x2f4   :  { %2396 = vmatprep.subr.bf16.mxu1 %v2802_v1 }
 0x2f7   :  { %2397 = vmatpush3.bf16.msra.mxu1 %v2921_v7 }
 0x2f8   :  { %2410 = vmatprep.subr.bf16.mxu1 %v2802_v1 }
 0x3c5   :  { %v317_v36 = vpop.f32.mrb[4].mxu1 }
 0x3c6   :  { %v323_v37 = vadd.f32 %v317_v36, %v159_v35  ;;  %v2384_v38 = vpop.f32.mrb[5].mxu1 }
 0x3c7   :  { %v320_v39 = vpop.f32.mrb[6].mxu1 }
 0x3c8   :  { %2612 = vtanh.f32 %v323_v37  ;;  %v2385_v40 = vpop.f32.mrb[7].mxu1  ;;  %v2216_v42 = vmul.f32 -1.442695, %v323_v37 }
 0x3ca   :  { %2614 = vpow2.f32 %v2216_v42 }
 0x3d2   :  { %v2613_v41 = vpop.eup %2612 }
 0x3d3   :  { %333 = vrot.lane.b32.xlu0 %v2613_v41, %s2805_s17 }
 0x3d4   :  { %v2615_v43 = vpop.eup %2614 }
 0x3d5   :  { %v327_v44 = vadd.f32 1.0, %v2615_v43 }
 0x3d7   :  { %2616 = vrcp.f32 %v327_v44 }
 0x3e1   :  { %v2617_v45 = vpop.eup %2616 }
 0x3e2   :  { %v331_v48 = vmul.f32 %v2617_v45, %v264_v29 }
 0x445   :  { %v334_v46 = vpop.permute.xlu0 %333 }
 0x446   :  { %v336_v47 = vmul.f32 %v2617_v45, %v334_v46  ;;  %v172_v46 = vadd.f32 %v2940_v9, %v2983_v58 }
 0x448   :  { %338 = vrot.lane.b32.xlu1 %v336_v47, %s2806_s3 }
 0x4ba   :  { %v339_v49 = vpop.permute.xlu1 %338 }
 0x4bb   :  { %v341_v50 = vadd.f32 %v339_v49, %v331_v48 }
 0x4bd   :  { %2618 = vtanh.f32 %v341_v50 }
 0x4c7   :  { %v2619_v53 = vpop.eup %2618 }
 0x4c8   :  { %344 = vrot.lane.b32.xlu0 %v2619_v53, %s2805_s17 }
 0x53a   :  { %v345_v54 = vpop.permute.xlu0 %344 }
 0x53b   :  { %v2976_v55 = vmul.f32 %v2617_v45, %v345_v54 }
 0x53d   :  { %v353_v56 = vpack.c.bf16 %v2976_v55, %v2976_v55 }
 0x53f   :  { %355 = vrot.lane.b32.xlu1 %v353_v56, %s2806_s3 }
 0x5b1   :  { %v356_v61 = vpop.permute.xlu1 %355 }
 0x5b2   :  { %2391 = vmatmul.mubr.msk.bf16.vlgmr.msra.gmra.mrb[8].mxu0 %vm202_vm3, %v356_v61 }
 0x5b3   :  { %2403 = vmatpush3.bf16.msra.mxu0 %v2906_v4  ;;  %2406 = vmatprep.mubr.msk.bf16.mxu0 %vm2803_vm0, %v2802_v1 }
 0x5b4   :  { %2404 = vmatprep.subr.bf16.mxu0 %v2802_v1 }
 0x5b7   :  { %2405 = vmatpush3.bf16.msra.mxu0 %v2921_v7 }
 0x5b8   :  { %2418 = vmatprep.subr.bf16.mxu0 %v2802_v1 }
 0x685   :  { %v394_v63 = vpop.f32.mrb[8].mxu0 }
 0x686   :  { %v400_v0 = vadd.f32 %v394_v63, %v164_v62  ;;  %v2392_v2 = vpop.f32.mrb[9].mxu0 }
 0x687   :  { %v397_v3 = vpop.f32.mrb[10].mxu0 }
 0x688   :  { %2620 = vtanh.f32 %v400_v0  ;;  %v2393_v5 = vpop.f32.mrb[11].mxu0  ;;  %v2218_v11 = vmul.f32 -1.442695, %v400_v0 }
 0x68a   :  { %2622 = vpow2.f32 %v2218_v11 }
 0x692   :  { %v2621_v6 = vpop.eup %2620 }
 0x693   :  { %410 = vrot.lane.b32.xlu0 %v2621_v6, %s2805_s17 }
 0x694   :  { %v2623_v12 = vpop.eup %2622 }
 0x695   :  { %v404_v14 = vadd.f32 1.0, %v2623_v12 }
 0x697   :  { %2624 = vrcp.f32 %v404_v14  ;;  %v175_v14 = vadd.f32 %v2940_v9, %v2987_v60 }
 0x6a1   :  { %v2625_v15 = vpop.eup %2624 }
 0x6a2   :  { %v408_v10 = vmul.f32 %v2625_v15, %v341_v50 }
 0x705   :  { %v411_v16 = vpop.permute.xlu0 %410 }
 0x706   :  { %v413_v17 = vmul.f32 %v2625_v15, %v411_v16 }
 0x708   :  { %415 = vrot.lane.b32.xlu1 %v413_v17, %s2806_s3 }
 0x77a   :  { %v416_v18 = vpop.permute.xlu1 %415 }
 0x77b   :  { %v418_v19 = vadd.f32 %v416_v18, %v408_v10 }
 0x77d   :  { %2626 = vtanh.f32 %v418_v19 }
 0x787   :  { %v2627_v20 = vpop.eup %2626 }
 0x788   :  { %421 = vrot.lane.b32.xlu0 %v2627_v20, %s2805_s17 }
 0x7fa   :  { %v422_v21 = vpop.permute.xlu0 %421 }
 0x7fb   :  { %v3001_v22 = vmul.f32 %v2625_v15, %v422_v21 }
 0x7fd   :  { %v430_v23 = vpack.c.bf16 %v3001_v22, %v3001_v22 }
 0x7ff   :  { %432 = vrot.lane.b32.xlu1 %v430_v23, %s2806_s3 }
 0x871   :  { %v433_v24 = vpop.permute.xlu1 %432 }
 0x872   :  { %2399 = vmatmul.mubr.msk.bf16.vlgmr.msra.gmra.mrb[8].mxu1 %vm202_vm3, %v433_v24 }
 0x873   :  { %2411 = vmatpush3.bf16.msra.mxu1 %v2906_v4  ;;  %2414 = vmatprep.mubr.msk.bf16.mxu1 %vm2803_vm0, %v2802_v1 }
 0x874   :  { %2412 = vmatprep.subr.bf16.mxu1 %v2802_v1 }
 0x877   :  { %2413 = vmatpush3.bf16.msra.mxu1 %v2921_v7 }
 0x878   :  { %2426 = vmatprep.subr.bf16.mxu1 %v2802_v1 }
 0x945   :  { %v471_v26 = vpop.f32.mrb[8].mxu1 }
 0x946   :  { %v477_v27 = vadd.f32 %v471_v26, %v167_v25  ;;  %v2400_v28 = vpop.f32.mrb[9].mxu1 }
 0x947   :  { %v474_v29 = vpop.f32.mrb[10].mxu1 }
 0x948   :  { %2628 = vtanh.f32 %v477_v27  ;;  %v2401_v30 = vpop.f32.mrb[11].mxu1  ;;  %v2220_v33 = vmul.f32 -1.442695, %v477_v27 }
 0x94a   :  { %2630 = vpow2.f32 %v2220_v33  ;;  %v180_v33 = vadd.f32 %v2981_v57, %v2940_v9 }
 0x952   :  { %v2629_v31 = vpop.eup %2628 }
 0x953   :  { %487 = vrot.lane.b32.xlu0 %v2629_v31, %s2805_s17 }
 0x954   :  { %v2631_v34 = vpop.eup %2630 }
 0x955   :  { %v481_v35 = vadd.f32 1.0, %v2631_v34 }
 0x957   :  { %2632 = vrcp.f32 %v481_v35 }
 0x961   :  { %v2633_v36 = vpop.eup %2632 }
 0x962   :  { %v485_v13 = vmul.f32 %v2633_v36, %v418_v19 }
 0x9c5   :  { %v488_v37 = vpop.permute.xlu0 %487 }
 0x9c6   :  { %v490_v38 = vmul.f32 %v2633_v36, %v488_v37 }
 0x9c8   :  { %492 = vrot.lane.b32.xlu1 %v490_v38, %s2806_s3 }
 0xa3a   :  { %v493_v39 = vpop.permute.xlu1 %492 }
 0xa3b   :  { %v495_v40 = vadd.f32 %v493_v39, %v485_v13 }
 0xa3d   :  { %2634 = vtanh.f32 %v495_v40 }
 0xa47   :  { %v2635_v41 = vpop.eup %2634 }
 0xa48   :  { %498 = vrot.lane.b32.xlu0 %v2635_v41, %s2805_s17 }
 0xaba   :  { %v499_v42 = vpop.permute.xlu0 %498 }
 0xabb   :  { %v3018_v43 = vmul.f32 %v2633_v36, %v499_v42 }
 0xabd   :  { %v507_v44 = vpack.c.bf16 %v3018_v43, %v3018_v43 }
 0xabf   :  { %509 = vrot.lane.b32.xlu1 %v507_v44, %s2806_s3 }
 0xb31   :  { %v510_v45 = vpop.permute.xlu1 %509 }
 0xb32   :  { %2407 = vmatmul.mubr.msk.bf16.vlgmr.msra.gmra.mrb[12].mxu0 %vm202_vm3, %v510_v45 }
 0xb33   :  { %2419 = vmatpush3.bf16.msra.mxu0 %v2906_v4  ;;  %2422 = vmatprep.mubr.msk.bf16.mxu0 %vm2803_vm0, %v2802_v1 }
 0xb34   :  { %2420 = vmatprep.subr.bf16.mxu0 %v2802_v1 }
 0xb37   :  { %2421 = vmatpush3.bf16.msra.mxu0 %v2921_v7 }
 0xc05   :  { %v548_v47 = vpop.f32.mrb[12].mxu0 }
 0xc06   :  { %v554_v48 = vadd.f32 %v548_v47, %v172_v46  ;;  %v2408_v49 = vpop.f32.mrb[13].mxu0 }
 0xc07   :  { %v551_v50 = vpop.f32.mrb[14].mxu0 }
 0xc08   :  { %2636 = vtanh.f32 %v554_v48  ;;  %v2409_v51 = vpop.f32.mrb[15].mxu0  ;;  %v2222_v53 = vmul.f32 -1.442695, %v554_v48  ;;  %v2594_v50 = vld [vmem:[%s3355_s4] sm:$0xff]  }
 0xc09   :  { %2434 = vmatprep.subr.bf16.mxu0 %v2594_v50 }
 0xc0a   :  { %2638 = vpow2.f32 %v2222_v53 }
 0xc12   :  { %v2637_v52 = vpop.eup %2636 }
 0xc13   :  { %564 = vrot.lane.b32.xlu0 %v2637_v52, %s2805_s17 }
 0xc14   :  { %v2639_v54 = vpop.eup %2638 }
 0xc15   :  { %v558_v56 = vadd.f32 1.0, %v2639_v54 }
 0xc17   :  { %2640 = vrcp.f32 %v558_v56 }
 0xc21   :  { %v2641_v61 = vpop.eup %2640 }
 0xc22   :  { %v562_v58 = vmul.f32 %v2641_v61, %v495_v40 }
 0xc85   :  { %v565_v62 = vpop.permute.xlu0 %564 }
 0xc86   :  { %v567_v63 = vmul.f32 %v2641_v61, %v565_v62 }
 0xc88   :  { %569 = vrot.lane.b32.xlu1 %v567_v63, %s2806_s3 }
 0xcfa   :  { %v570_v0 = vpop.permute.xlu1 %569 }
 0xcfb   :  { %v572_v2 = vadd.f32 %v570_v0, %v562_v58  ;;  %v3093_v0 = vld [vmem:[%s3356_s5] sm:$0xff]  }
 0xcfd   :  { %2642 = vtanh.f32 %v572_v2 }
 0xd07   :  { %v2643_v3 = vpop.eup %2642 }
 0xd08   :  { %575 = vrot.lane.b32.xlu0 %v2643_v3, %s2805_s17 }
 0xd7a   :  { %v576_v5 = vpop.permute.xlu0 %575 }
 0xd7b   :  { %v3034_v6 = vmul.f32 %v2641_v61, %v576_v5 }
 0xd7d   :  { %v584_v11 = vpack.c.bf16 %v3034_v6, %v3034_v6 }
 0xd7f   :  { %586 = vrot.lane.b32.xlu1 %v584_v11, %s2806_s3 }
 0xdf1   :  { %v587_v12 = vpop.permute.xlu1 %586 }
 0xdf2   :  { %2415 = vmatmul.mubr.msk.bf16.vlgmr.msra.gmra.mrb[12].mxu1 %vm202_vm3, %v587_v12 }
 0xdf3   :  { %2427 = vmatpush3.bf16.msra.mxu1 %v2906_v4  ;;  %2430 = vmatprep.mubr.msk.bf16.mxu1 %vm2803_vm0, %v2802_v1 }
 0xdf4   :  { %2428 = vmatprep.subr.bf16.mxu1 %v2802_v1 }
 0xdf7   :  { %2429 = vmatpush3.bf16.msra.mxu1 %v2921_v7 }
 0xdf8   :  { %2446 = vmatprep.subr.bf16.mxu1 %v2802_v1 }
 0xec5   :  { %v625_v15 = vpop.f32.mrb[12].mxu1 }
 0xec6   :  { %v631_v16 = vadd.f32 %v625_v15, %v175_v14  ;;  %v2416_v17 = vpop.f32.mrb[13].mxu1 }
 0xec7   :  { %v628_v10 = vpop.f32.mrb[14].mxu1 }
 0xec8   :  { %2644 = vtanh.f32 %v631_v16  ;;  %v2417_v18 = vpop.f32.mrb[15].mxu1  ;;  %v2224_v4 = vmul.f32 -1.442695, %v631_v16 }
 0xeca   :  { %2646 = vpow2.f32 %v2224_v4 }
 0xed2   :  { %v2645_v19 = vpop.eup %2644 }
 0xed3   :  { %641 = vrot.lane.b32.xlu0 %v2645_v19, %s2805_s17  ;;  %v3127_v19 = vld [vmem:[#allocation7] ss:$0 sm:$0xff] }
 0xed4   :  { %v2647_v20 = vpop.eup %2646 }
 0xed5   :  { %v635_v21 = vadd.f32 1.0, %v2647_v20 }
 0xed7   :  { %2648 = vrcp.f32 %v635_v21 }
 0xee1   :  { %v2649_v7 = vpop.eup %2648 }
 0xee2   :  { %v639_v60 = vmul.f32 %v2649_v7, %v572_v2  ;;  %v3101_v2 = vld [vmem:[%s3356_s5 + $0x8] sm:$0xff]  }
 0xf45   :  { %v642_v23 = vpop.permute.xlu0 %641 }
 0xf46   :  { %v644_v24 = vmul.f32 %v2649_v7, %v642_v23 }
 0xf48   :  { %646 = vrot.lane.b32.xlu1 %v644_v24, %s2806_s3 }
 0xfba   :  { %v647_v25 = vpop.permute.xlu1 %646 }
 0xfbb   :  { %v649_v26 = vadd.f32 %v647_v25, %v639_v60 }
 0xfbd   :  { %2650 = vtanh.f32 %v649_v26 }
 0xfc7   :  { %v2651_v27 = vpop.eup %2650 }
 0xfc8   :  { %652 = vrot.lane.b32.xlu0 %v2651_v27, %s2805_s17 }
0x103a   :  { %v653_v28 = vpop.permute.xlu0 %652 }
0x103b   :  { %v3051_v29 = vmul.f32 %v2649_v7, %v653_v28 }
0x103d   :  { %v661_v30 = vpack.c.bf16 %v3051_v29, %v3051_v29 }
0x103f   :  { %663 = vrot.lane.b32.xlu1 %v661_v30, %s2806_s3 }
0x10b1   :  { %v664_v31 = vpop.permute.xlu1 %663 }
0x10b2   :  { %2423 = vmatmul.mubr.msk.bf16.vlgmr.msra.gmra.mrb[16].mxu0 %vm202_vm3, %v664_v31 }
0x10b3   :  { %2435 = vmatpush3.bf16.msra.mxu0 %v2594_v50 }
0x1185   :  { %v702_v34 = vpop.f32.mrb[16].mxu0 }
0x1186   :  { %v708_v35 = vadd.f32 %v702_v34, %v180_v33  ;;  %v2424_v36 = vpop.f32.mrb[17].mxu0 }
0x1187   :  { %v705_v37 = vpop.f32.mrb[18].mxu0 }
0x1188   :  { %2652 = vtanh.f32 %v708_v35  ;;  %v2425_v38 = vpop.f32.mrb[19].mxu0  ;;  %v2226_v39 = vmul.f32 -1.442695, %v708_v35 }
0x118a   :  { %2654 = vpow2.f32 %v2226_v39 }
0x1192   :  { %v2653_v13 = vpop.eup %2652 }
0x1193   :  { %718 = vrot.lane.b32.xlu0 %v2653_v13, %s2805_s17 }
0x1194   :  { %v2655_v40 = vpop.eup %2654 }
0x1195   :  { %v712_v41 = vadd.f32 1.0, %v2655_v40 }
0x1197   :  { %2656 = vrcp.f32 %v712_v41 }
0x11a1   :  { %v2657_v42 = vpop.eup %2656 }
0x11a2   :  { %v716_v57 = vmul.f32 %v2657_v42, %v649_v26 }
0x1205   :  { %v719_v44 = vpop.permute.xlu0 %718 }
0x1206   :  { %v721_v45 = vmul.f32 %v2657_v42, %v719_v44 }
0x1208   :  { %723 = vrot.lane.b32.xlu1 %v721_v45, %s2806_s3 }
0x120c   :  { %272 = vrot.lane.b32.xlu1 %v2950_v32, %s2806_s3  ;;  %v2595_v32 = vld [vmem:[%s3355_s4 + $0x8] sm:$0xff]  }
0x120d   :  { %2436 = vmatprep.subr.bf16.mxu0 %v2595_v32 }
0x120e   :  { %2437 = vmatpush3.bf16.msra.mxu0 %v2595_v32 }
0x120f   :  { %2462 = vmatprep.subr.bf16.mxu0 %v2802_v1 }
0x1210   :  { %426 = vrot.lane.b32.xlu1 %v3001_v22, %s2806_s3 }
0x127a   :  { %v724_v46 = vpop.permute.xlu1 %723 }
0x127b   :  { %v3065_v47 = vadd.f32 %v724_v46, %v716_v57 }
0x127d   :  { %2658 = vtanh.f32 %v3065_v47 }
0x127e   :  { %v273_v48 = vpop.permute.xlu1 %272 }
0x127f   :  { %275 = vst.msk [vmem:[#allocation2] sm:$0xff] %vm202_vm3, %v273_v48 }
0x1282   :  { %v427_v49 = vpop.permute.xlu1 %426 }
0x1283   :  { %429 = vst.msk [vmem:[#allocation2 + $0x10] sm:$0xff] %vm202_vm3, %v427_v49 }
0x1286   :  { %v815_v61 = vld [vmem:[#allocation2] sm:$0xff] }
0x1287   :  { %v2659_v22 = vpop.eup %2658 }
0x1288   :  { %729 = vrot.lane.b32.xlu0 %v2659_v22, %s2805_s17 }
0x128c   :  { %349 = vrot.lane.b32.xlu0 %v2976_v55, %s2806_s3 }
0x1290   :  { %503 = vrot.lane.b32.xlu0 %v3018_v43, %s2806_s3  ;;  %v817_v43 = vld [vmem:[#allocation2 + $0x10] sm:$0xff] }
0x12fa   :  { %v730_v51 = vpop.permute.xlu0 %729 }
0x12fb   :  { %v3082_v52 = vmul.f32 %v2657_v42, %v730_v51 }
0x12fd   :  { %v738_v53 = vpack.c.bf16 %v3082_v52, %v3082_v52 }
0x12fe   :  { %v350_v54 = vpop.permute.xlu0 %349 }
0x12ff   :  { %352 = vst.msk [vmem:[#allocation2 + $0x8] sm:$0xff] %vm202_vm3, %v350_v54  ;;  %740 = vrot.lane.b32.xlu1 %v738_v53, %s2806_s3 }
0x1302   :  { %v504_v56 = vpop.permute.xlu0 %503 }
0x1303   :  { %506 = vst.msk [vmem:[#allocation2 + $0x18] sm:$0xff] %vm202_vm3, %v504_v56 }
0x1306   :  { %v816_v62 = vld [vmem:[#allocation2 + $0x8] sm:$0xff] }
0x1307   :  { %v823_v55 = vpack.c.bf16 %v816_v62, %v815_v61 }
0x1309   :  { %2438 = vmatprep.mubr.msk.bf16.mxu0 %vm202_vm3, %v823_v55 }
0x130a   :  { %v818_v63 = vld [vmem:[#allocation2 + $0x18] sm:$0xff] }
0x130b   :  { %v824_v58 = vpack.c.bf16 %v818_v63, %v817_v43 }
0x130d   :  { %2439 = vmatmul.mubr.msk.bf16.vlgmr.msra.gmra.mrb[20].mxu0 %vm202_vm3, %v824_v58 }
0x130e   :  { %2463 = vmatpush3.bf16.msra.mxu0 %v3093_v0 }
0x130f   :  { %2464 = vmatprep.subr.bf16.mxu0 %v2802_v1 }
0x1312   :  { %2465 = vmatpush3.bf16.msra.mxu0 %v3101_v2 }
0x1313   :  { %2478 = vmatprep.subr.bf16.mxu0 %v2802_v1 }
0x1371   :  { %v741_v3 = vpop.permute.xlu1 %740 }
0x1372   :  { %2431 = vmatmul.mubr.msk.bf16.vlgmr.msra.gmra.mrb[16].mxu1 %vm202_vm3, %v741_v3 }
0x1373   :  { %2447 = vmatpush3.bf16.msra.mxu1 %v3093_v0  ;;  %2450 = vmatprep.mubr.msk.bf16.mxu1 %vm2803_vm0, %v2802_v1 }
0x1374   :  { %2448 = vmatprep.subr.bf16.mxu1 %v2802_v1 }
0x1377   :  { %2449 = vmatpush3.bf16.msra.mxu1 %v3101_v2 }
0x1378   :  { %2454 = vmatprep.subr.bf16.mxu1 %v2802_v1 }
0x137a   :  { %2451 = vmatmul.mubr.bf16.vlgmr.msra.gmra.mrb[20].mxu1 %v2804_v8  ;;  %v183_v8 = vadd.f32 %v2985_v59, %v2940_v9 }
0x137b   :  { %2455 = vmatpush3.bf16.msra.mxu1 %v3093_v0  ;;  %2458 = vmatprep.mubr.msk.bf16.mxu1 %vm2803_vm0, %v2802_v1 }
0x137c   :  { %2456 = vmatprep.subr.bf16.mxu1 %v2802_v1 }
0x137f   :  { %2457 = vmatpush3.bf16.msra.mxu1 %v3101_v2 }
0x1380   :  { %2470 = vmatprep.subr.bf16.mxu1 %v2802_v1 }
0x13e0   :  { %v3119_v5 = vpop.f32.mrb[20].mxu0 }
0x13e1   :  { %v896_v11 = vpop.f32.mrb[21].mxu0 }
0x13e2   :  { %v3121_v12 = vpop.f32.mrb[22].mxu0  ;;  %v897_v4 = vadd.f32 %v3127_v19, %v896_v11 }
0x13e3   :  { %v3123_v14 = vpop.f32.mrb[23].mxu0 }
0x13e4   :  { %v900_v22 = vadd.f32 %v3127_v19, %v3123_v14 }
0x1445   :  { %v779_v15 = vpop.f32.mrb[16].mxu1 }
0x1446   :  { %v785_v16 = vadd.f32 %v779_v15, %v183_v8  ;;  %v2432_v17 = vpop.f32.mrb[17].mxu1 }
0x1447   :  { %v782_v10 = vpop.f32.mrb[18].mxu1 }
0x1448   :  { %v2433_v18 = vpop.f32.mrb[19].mxu1  ;;  %v2228_v36 = vmul.f32 -1.442695, %v785_v16 }
0x144d   :  { %v977_v20 = vpop.f32.mrb[20].mxu1 }
0x144e   :  { %v983_v21 = vadd.f32 %v977_v20, %v897_v4  ;;  %v2452_v7 = vpop.f32.mrb[21].mxu1 }
0x144f   :  { %v980_v23 = vpop.f32.mrb[22].mxu1 }
0x1450   :  { %2660 = vtanh.f32 %v983_v21  ;;  %v2453_v24 = vpop.f32.mrb[23].mxu1  ;;  %v2238_v25 = vmul.f32 -1.442695, %v983_v21 }
0x1452   :  { %2662 = vpow2.f32 %v2238_v25 }
0x145a   :  { %v2661_v60 = vpop.eup %2660 }
0x145b   :  { %993 = vrot.lane.b32.xlu0 %v2661_v60, %s2805_s17 }
0x145c   :  { %v2663_v9 = vpop.eup %2662 }
0x145d   :  { %v987_v59 = vadd.f32 1.0, %v2663_v9 }
0x145f   :  { %2664 = vrcp.f32 %v987_v59 }
0x1469   :  { %v2665_v26 = vpop.eup %2664 }
0x146a   :  { %v991_v30 = vmul.f32 0.0, %v2665_v26 }
0x14cd   :  { %v994_v27 = vpop.permute.xlu0 %993 }
0x14ce   :  { %v996_v28 = vmul.f32 %v2665_v26, %v994_v27  ;;  %v905_v27 = vadd.f32 %v3119_v5, %v3127_v19 }
0x14d0   :  { %998 = vrot.lane.b32.xlu1 %v996_v28, %s2806_s3 }
0x1542   :  { %v999_v31 = vpop.permute.xlu1 %998 }
0x1543   :  { %v1001_v33 = vadd.f32 %v999_v31, %v991_v30 }
0x1545   :  { %2666 = vtanh.f32 %v1001_v33 }
0x1546   :  { %2668 = vtanh.f32 %v785_v16 }
0x1547   :  { %2670 = vpow2.f32 %v2228_v36 }
0x154f   :  { %v2667_v34 = vpop.eup %2666 }
0x1550   :  { %1004 = vrot.lane.b32.xlu0 %v2667_v34, %s2805_s17  ;;  %v2669_v35 = vpop.eup %2668 }
0x1551   :  { %v2671_v37 = vpop.eup %2670 }
0x1552   :  { %v789_v38 = vadd.f32 1.0, %v2671_v37 }
0x1554   :  { %795 = vrot.lane.b32.xlu0 %v2669_v35, %s2805_s17  ;;  %2672 = vrcp.f32 %v789_v38 }
0x155e   :  { %v2673_v41 = vpop.eup %2672 }
0x155f   :  { %v793_v57 = vmul.f32 %v2673_v41, %v3065_v47 }
0x15c2   :  { %v1005_v13 = vpop.permute.xlu0 %1004 }
0x15c3   :  { %v3134_v39 = vmul.f32 %v2665_v26, %v1005_v13 }
0x15c5   :  { %v1013_v40 = vpack.c.bf16 %v3134_v39, %v3134_v39 }
0x15c6   :  { %v796_v42 = vpop.permute.xlu0 %795 }
0x15c7   :  { %v798_v44 = vmul.f32 %v2673_v41, %v796_v42  ;;  %1015 = vrot.lane.b32.xlu1 %v1013_v40, %s2806_s3 }
0x15c9   :  { %800 = vrot.lane.b32.xlu0 %v798_v44, %s2806_s3 }
0x1639   :  { %v1016_v45 = vpop.permute.xlu1 %1015 }
0x163a   :  { %2459 = vmatmul.mubr.msk.bf16.vlgmr.msra.gmra.mrb[24].mxu1 %vm202_vm3, %v1016_v45 }
0x163b   :  { %v801_v46 = vpop.permute.xlu0 %800  ;;  %2471 = vmatpush3.bf16.msra.mxu1 %v3093_v0  ;;  %2474 = vmatprep.mubr.msk.bf16.mxu1 %vm2803_vm0, %v2802_v1 }
0x163c   :  { %v803_v48 = vadd.f32 %v801_v46, %v793_v57  ;;  %2472 = vmatprep.subr.bf16.mxu1 %v2802_v1 }
0x163e   :  { %2674 = vtanh.f32 %v803_v48 }
0x163f   :  { %2473 = vmatpush3.bf16.msra.mxu1 %v3101_v2 }
0x1640   :  { %2486 = vmatprep.subr.bf16.mxu1 %v2802_v1 }
0x1648   :  { %v2675_v49 = vpop.eup %2674 }
0x1649   :  { %806 = vrot.lane.b32.xlu0 %v2675_v49, %s2805_s17 }
0x164d   :  { %580 = vrot.lane.b32.xlu0 %v3034_v6, %s2806_s3 }
0x1651   :  { %734 = vrot.lane.b32.xlu0 %v3082_v52, %s2806_s3 }
0x16bb   :  { %v807_v47 = vpop.permute.xlu0 %806 }
0x16bc   :  { %v809_v15 = vmul.f32 %v2673_v41, %v807_v47  ;;  %v908_v47 = vadd.f32 %v3121_v12, %v3127_v19 }
0x16bf   :  { %v581_v50 = vpop.permute.xlu0 %580 }
0x16c0   :  { %583 = vst.msk [vmem:[#allocation2 + $0x20] sm:$0xff] %vm202_vm3, %v581_v50 }
0x16c3   :  { %v735_v32 = vpop.permute.xlu0 %734 }
0x16c4   :  { %737 = vst.msk [vmem:[#allocation2 + $0x30] sm:$0xff] %vm202_vm3, %v735_v32 }
0x16c7   :  { %v819_v20 = vld [vmem:[#allocation2 + $0x20] sm:$0xff] }
0x16cb   :  { %v821_v7 = vld [vmem:[#allocation2 + $0x30] sm:$0xff] }
0x170d   :  { %v1054_v51 = vpop.f32.mrb[24].mxu1 }
0x170e   :  { %v1060_v53 = vadd.f32 %v1054_v51, %v900_v22  ;;  %v2460_v54 = vpop.f32.mrb[25].mxu1 }
0x170f   :  { %v1057_v56 = vpop.f32.mrb[26].mxu1 }
0x1710   :  { %2676 = vtanh.f32 %v1060_v53  ;;  %v2461_v61 = vpop.f32.mrb[27].mxu1  ;;  %v2240_v52 = vmul.f32 -1.442695, %v1060_v53 }
0x1712   :  { %2678 = vpow2.f32 %v2240_v52 }
0x171a   :  { %v2677_v6 = vpop.eup %2676 }
0x171b   :  { %1070 = vrot.lane.b32.xlu1 %v2677_v6, %s2805_s17 }
0x171c   :  { %v2679_v62 = vpop.eup %2678 }
0x171d   :  { %v1064_v55 = vadd.f32 1.0, %v2679_v62 }
0x171f   :  { %2680 = vrcp.f32 %v1064_v55 }
0x1729   :  { %v2681_v43 = vpop.eup %2680 }
0x172a   :  { %v1068_v3 = vmul.f32 %v2681_v43, %v1001_v33 }
0x178d   :  { %v1071_v63 = vpop.permute.xlu1 %1070 }
0x178e   :  { %v1073_v58 = vmul.f32 %v2681_v43, %v1071_v63 }
0x1790   :  { %1075 = vrot.lane.b32.xlu1 %v1073_v58, %s2806_s3 }
0x1802   :  { %v1076_v11 = vpop.permute.xlu1 %1075 }
0x1803   :  { %v1078_v14 = vadd.f32 %v1076_v11, %v1068_v3 }
0x1805   :  { %2682 = vtanh.f32 %v1078_v14 }
0x180f   :  { %v2683_v8 = vpop.eup %2682 }
0x1810   :  { %1081 = vrot.lane.b32.xlu1 %v2683_v8, %s2805_s17 }
0x1814   :  { %657 = vrot.lane.b32.xlu1 %v3051_v29, %s2806_s3 }
0x1818   :  { %811 = vrot.lane.b32.xlu1 %v809_v15, %s2806_s3 }
0x1882   :  { %v1082_v16 = vpop.permute.xlu1 %1081 }
0x1883   :  { %v3163_v17 = vmul.f32 %v2681_v43, %v1082_v16 }
0x1885   :  { %v1090_v10 = vpack.c.bf16 %v3163_v17, %v3163_v17 }
0x1886   :  { %v658_v18 = vpop.permute.xlu1 %657 }
0x1887   :  { %660 = vst.msk [vmem:[#allocation2 + $0x28] sm:$0xff] %vm202_vm3, %v658_v18  ;;  %1092 = vrot.lane.b32.xlu0 %v1090_v10, %s2806_s3 }
0x188a   :  { %v812_v4 = vpop.permute.xlu1 %811 }
0x188b   :  { %814 = vst.msk [vmem:[#allocation2 + $0x38] sm:$0xff] %vm202_vm3, %v812_v4 }
0x188e   :  { %v820_v21 = vld [vmem:[#allocation2 + $0x28] sm:$0xff] }
0x188f   :  { %v825_v29 = vpack.c.bf16 %v820_v21, %v819_v20 }
0x1891   :  { %2442 = vmatprep.mubr.msk.bf16.mxu0 %vm202_vm3, %v825_v29 }
0x1892   :  { %v822_v23 = vld [vmem:[#allocation2 + $0x38] sm:$0xff] }
0x1893   :  { %v826_v24 = vpack.c.bf16 %v822_v23, %v821_v7 }
0x1895   :  { %2443 = vmatmul.mubr.msk.bf16.gmra.mrb[24].mxu0 %vm202_vm3, %v826_v24 }
0x1896   :  { %2466 = vmatprep.mubr.msk.bf16.mxu0 %vm2803_vm0, %v2802_v1 }
0x18f9   :  { %v1093_v60 = vpop.permute.xlu0 %1092 }
0x18fa   :  { %2467 = vmatmul.mubr.msk.bf16.vlgmr.msra.gmra.mrb[28].mxu0 %vm202_vm3, %v1093_v60 }
0x18fb   :  { %2479 = vmatpush3.bf16.msra.mxu0 %v3093_v0  ;;  %2482 = vmatprep.mubr.msk.bf16.mxu0 %vm2803_vm0, %v2802_v1 }
0x18fc   :  { %2480 = vmatprep.subr.bf16.mxu0 %v2802_v1 }
0x18ff   :  { %2481 = vmatpush3.bf16.msra.mxu0 %v3101_v2 }
0x1900   :  { %2494 = vmatprep.subr.bf16.mxu0 %v2802_v1 }
0x1968   :  { %v3181_v25 = vpop.f32.mrb[24].mxu0 }
0x1969   :  { %v3183_v9 = vpop.f32.mrb[25].mxu0 }
0x196a   :  { %v3185_v59 = vpop.f32.mrb[26].mxu0  ;;  %v913_v15 = vadd.f32 %v3127_v19, %v3183_v9 }
0x196b   :  { %v3187_v26 = vpop.f32.mrb[27].mxu0 }
0x19cd   :  { %v1131_v28 = vpop.f32.mrb[28].mxu0 }
0x19ce   :  { %v1137_v30 = vadd.f32 %v1131_v28, %v905_v27  ;;  %v2468_v31 = vpop.f32.mrb[29].mxu0 }
0x19cf   :  { %v1134_v33 = vpop.f32.mrb[30].mxu0 }
0x19d0   :  { %2684 = vtanh.f32 %v1137_v30  ;;  %v2469_v34 = vpop.f32.mrb[31].mxu0  ;;  %v2242_v36 = vmul.f32 -1.442695, %v1137_v30 }
0x19d2   :  { %2686 = vpow2.f32 %v2242_v36 }
0x19da   :  { %v2685_v35 = vpop.eup %2684 }
0x19db   :  { %1147 = vrot.lane.b32.xlu1 %v2685_v35, %s2805_s17 }
0x19dc   :  { %v2687_v37 = vpop.eup %2686 }
0x19dd   :  { %v1141_v38 = vadd.f32 1.0, %v2687_v37  ;;  %v916_v37 = vadd.f32 %v3127_v19, %v3187_v26 }
0x19df   :  { %2688 = vrcp.f32 %v1141_v38 }
0x19e9   :  { %v2689_v13 = vpop.eup %2688 }
0x19ea   :  { %v1145_v5 = vmul.f32 %v2689_v13, %v1078_v14 }
0x1a4d   :  { %v1148_v40 = vpop.permute.xlu1 %1147 }
0x1a4e   :  { %v1150_v41 = vmul.f32 %v2689_v13, %v1148_v40 }
0x1a50   :  { %1152 = vrot.lane.b32.xlu0 %v1150_v41, %s2806_s3 }
0x1ac2   :  { %v1153_v42 = vpop.permute.xlu0 %1152 }
0x1ac3   :  { %v1155_v44 = vadd.f32 %v1153_v42, %v1145_v5 }
0x1ac5   :  { %2690 = vtanh.f32 %v1155_v44 }
0x1acf   :  { %v2691_v45 = vpop.eup %2690 }
0x1ad0   :  { %1158 = vrot.lane.b32.xlu1 %v2691_v45, %s2805_s17 }
0x1b42   :  { %v1159_v57 = vpop.permute.xlu1 %1158 }
0x1b43   :  { %v3194_v46 = vmul.f32 %v2689_v13, %v1159_v57 }
0x1b45   :  { %v1167_v48 = vpack.c.bf16 %v3194_v46, %v3194_v46 }
0x1b47   :  { %1169 = vrot.lane.b32.xlu0 %v1167_v48, %s2806_s3 }
0x1bb9   :  { %v1170_v49 = vpop.permute.xlu0 %1169 }
0x1bba   :  { %2475 = vmatmul.mubr.msk.bf16.vlgmr.msra.gmra.mrb[28].mxu1 %vm202_vm3, %v1170_v49 }
0x1bbb   :  { %2487 = vmatpush3.bf16.msra.mxu1 %v3093_v0  ;;  %2490 = vmatprep.mubr.msk.bf16.mxu1 %vm2803_vm0, %v2802_v1 }
0x1bbc   :  { %2488 = vmatprep.subr.bf16.mxu1 %v2802_v1 }
0x1bbf   :  { %2489 = vmatpush3.bf16.msra.mxu1 %v3101_v2 }
0x1bc0   :  { %2502 = vmatprep.subr.bf16.mxu1 %v2802_v1 }
0x1c8d   :  { %v1208_v50 = vpop.f32.mrb[28].mxu1 }
0x1c8e   :  { %v1214_v32 = vadd.f32 %v1208_v50, %v908_v47  ;;  %v2476_v22 = vpop.f32.mrb[29].mxu1 }
0x1c8f   :  { %v1211_v51 = vpop.f32.mrb[30].mxu1 }
0x1c90   :  { %2692 = vtanh.f32 %v1214_v32  ;;  %v2477_v53 = vpop.f32.mrb[31].mxu1  ;;  %v2244_v56 = vmul.f32 -1.442695, %v1214_v32 }
0x1c92   :  { %2694 = vpow2.f32 %v2244_v56 }
0x1c9a   :  { %v2693_v54 = vpop.eup %2692 }
0x1c9b   :  { %1224 = vrot.lane.b32.xlu1 %v2693_v54, %s2805_s17  ;;  %v921_v54 = vadd.f32 %v3181_v25, %v3127_v19 }
0x1c9c   :  { %v2695_v61 = vpop.eup %2694 }
0x1c9d   :  { %v1218_v6 = vadd.f32 1.0, %v2695_v61 }
0x1c9f   :  { %2696 = vrcp.f32 %v1218_v6 }
0x1ca9   :  { %v2697_v52 = vpop.eup %2696 }
0x1caa   :  { %v1222_v12 = vmul.f32 %v2697_v52, %v1155_v44 }
0x1d0d   :  { %v1225_v62 = vpop.permute.xlu1 %1224 }
0x1d0e   :  { %v1227_v55 = vmul.f32 %v2697_v52, %v1225_v62 }
0x1d10   :  { %1229 = vrot.lane.b32.xlu0 %v1227_v55, %s2806_s3 }
0x1d82   :  { %v1230_v43 = vpop.permute.xlu0 %1229 }
0x1d83   :  { %v1232_v63 = vadd.f32 %v1230_v43, %v1222_v12 }
0x1d85   :  { %2698 = vtanh.f32 %v1232_v63 }
0x1d8f   :  { %v2699_v58 = vpop.eup %2698 }
0x1d90   :  { %1235 = vrot.lane.b32.xlu1 %v2699_v58, %s2805_s17 }
0x1e02   :  { %v1236_v3 = vpop.permute.xlu1 %1235 }
0x1e03   :  { %v3211_v11 = vmul.f32 %v2697_v52, %v1236_v3 }
0x1e05   :  { %v1244_v14 = vpack.c.bf16 %v3211_v11, %v3211_v11 }
0x1e07   :  { %1246 = vrot.lane.b32.xlu0 %v1244_v14, %s2806_s3 }
0x1e79   :  { %v1247_v8 = vpop.permute.xlu0 %1246 }
0x1e7a   :  { %2483 = vmatmul.mubr.msk.bf16.vlgmr.msra.gmra.mrb[32].mxu0 %vm202_vm3, %v1247_v8 }
0x1e7b   :  { %2495 = vmatpush3.bf16.msra.mxu0 %v3093_v0  ;;  %2498 = vmatprep.mubr.msk.bf16.mxu0 %vm2803_vm0, %v2802_v1 }
0x1e7c   :  { %2496 = vmatprep.subr.bf16.mxu0 %v2802_v1 }
0x1e7f   :  { %2497 = vmatpush3.bf16.msra.mxu0 %v3101_v2 }
0x1f4d   :  { %v1285_v16 = vpop.f32.mrb[32].mxu0 }
0x1f4e   :  { %v1291_v10 = vadd.f32 %v1285_v16, %v913_v15  ;;  %v2484_v18 = vpop.f32.mrb[33].mxu0 }
0x1f4f   :  { %v1288_v4 = vpop.f32.mrb[34].mxu0 }
0x1f50   :  { %2700 = vtanh.f32 %v1291_v10  ;;  %v2485_v20 = vpop.f32.mrb[35].mxu0  ;;  %v2246_v29 = vmul.f32 -1.442695, %v1291_v10 }
0x1f52   :  { %2702 = vpow2.f32 %v2246_v29 }
0x1f5a   :  { %v2701_v21 = vpop.eup %2700 }
0x1f5b   :  { %1301 = vrot.lane.b32.xlu1 %v2701_v21, %s2805_s17  ;;  %v924_v21 = vadd.f32 %v3185_v59, %v3127_v19 }
0x1f5c   :  { %v2703_v7 = vpop.eup %2702 }
0x1f5d   :  { %v1295_v23 = vadd.f32 1.0, %v2703_v7 }
0x1f5f   :  { %2704 = vrcp.f32 %v1295_v23 }
0x1f69   :  { %v2705_v24 = vpop.eup %2704 }
0x1f6a   :  { %v1299_v9 = vmul.f32 %v2705_v24, %v1232_v63 }
0x1fcd   :  { %v1302_v60 = vpop.permute.xlu1 %1301 }
0x1fce   :  { %v1304_v27 = vmul.f32 %v2705_v24, %v1302_v60 }
0x1fd0   :  { %1306 = vrot.lane.b32.xlu0 %v1304_v27, %s2806_s3 }
0x2042   :  { %v1307_v28 = vpop.permute.xlu0 %1306 }
0x2043   :  { %v1309_v30 = vadd.f32 %v1307_v28, %v1299_v9 }
0x2045   :  { %2706 = vtanh.f32 %v1309_v30 }
0x204f   :  { %v2707_v31 = vpop.eup %2706 }
0x2050   :  { %1312 = vrot.lane.b32.xlu1 %v2707_v31, %s2805_s17 }
0x20c2   :  { %v1313_v33 = vpop.permute.xlu1 %1312 }
0x20c3   :  { %v3227_v34 = vmul.f32 %v2705_v24, %v1313_v33 }
0x20c5   :  { %v1321_v35 = vpack.c.bf16 %v3227_v34, %v3227_v34 }
0x20c7   :  { %1323 = vrot.lane.b32.xlu0 %v1321_v35, %s2806_s3 }
0x2139   :  { %v1324_v36 = vpop.permute.xlu0 %1323 }
0x213a   :  { %2491 = vmatmul.mubr.msk.bf16.vlgmr.msra.gmra.mrb[32].mxu1 %vm202_vm3, %v1324_v36 }
0x213b   :  { %2503 = vmatpush3.bf16.msra.mxu1 %v3093_v0  ;;  %2506 = vmatprep.mubr.msk.bf16.mxu1 %vm2803_vm0, %v2802_v1 }
0x213c   :  { %2504 = vmatprep.subr.bf16.mxu1 %v2802_v1 }
0x213f   :  { %2505 = vmatpush3.bf16.msra.mxu1 %v3101_v2 }
0x220d   :  { %v1362_v38 = vpop.f32.mrb[32].mxu1 }
0x220e   :  { %v1368_v13 = vadd.f32 %v1362_v38, %v916_v37  ;;  %v2492_v40 = vpop.f32.mrb[33].mxu1 }
0x220f   :  { %v1365_v41 = vpop.f32.mrb[34].mxu1 }
0x2210   :  { %2708 = vtanh.f32 %v1368_v13  ;;  %v2493_v5 = vpop.f32.mrb[35].mxu1  ;;  %v2248_v0 = vmul.f32 -1.442695, %v1368_v13 }
0x2212   :  { %2710 = vpow2.f32 %v2248_v0 }
0x221a   :  { %v2709_v42 = vpop.eup %2708 }
0x221b   :  { %1378 = vrot.lane.b32.xlu1 %v2709_v42, %s2805_s17 }
0x221c   :  { %v2711_v44 = vpop.eup %2710 }
0x221d   :  { %v1372_v45 = vadd.f32 1.0, %v2711_v44 }
0x221f   :  { %2712 = vrcp.f32 %v1372_v45 }
0x2229   :  { %v2713_v57 = vpop.eup %2712 }
0x222a   :  { %v1376_v26 = vmul.f32 %v2713_v57, %v1309_v30 }
0x228d   :  { %v1379_v48 = vpop.permute.xlu1 %1378 }
0x228e   :  { %v1381_v2 = vmul.f32 %v2713_v57, %v1379_v48 }
0x2290   :  { %1383 = vrot.lane.b32.xlu0 %v1381_v2, %s2806_s3 }
0x2302   :  { %v1384_v49 = vpop.permute.xlu0 %1383 }
0x2303   :  { %v1386_v47 = vadd.f32 %v1384_v49, %v1376_v26 }
0x2305   :  { %2714 = vtanh.f32 %v1386_v47 }
0x230f   :  { %v2715_v50 = vpop.eup %2714 }
0x2310   :  { %1389 = vrot.lane.b32.xlu1 %v2715_v50, %s2805_s17 }
0x2382   :  { %v1390_v32 = vpop.permute.xlu1 %1389 }
0x2383   :  { %v3243_v22 = vmul.f32 %v2713_v57, %v1390_v32 }
0x2385   :  { %v1398_v51 = vpack.c.bf16 %v3243_v22, %v3243_v22 }
0x2387   :  { %1400 = vrot.lane.b32.xlu0 %v1398_v51, %s2806_s3 }
0x23f9   :  { %v1401_v53 = vpop.permute.xlu0 %1400 }
0x23fa   :  { %2499 = vmatmul.mubr.msk.bf16.vlgmr.msra.gmra.mrb[36].mxu0 %vm202_vm3, %v1401_v53  ;;  %v1691_v53 = vlaneseq }
0x24cd   :  { %v1439_v56 = vpop.f32.mrb[36].mxu0 }
0x24ce   :  { %v1445_v61 = vadd.f32 %v1439_v56, %v921_v54  ;;  %v2500_v6 = vpop.f32.mrb[37].mxu0  ;;  %v1692_v54 = vshrl.u32 %v1691_v53, 7 }
0x24cf   :  { %v1442_v52 = vpop.f32.mrb[38].mxu0 }
0x24d0   :  { %2716 = vtanh.f32 %v1445_v61  ;;  %v2501_v62 = vpop.f32.mrb[39].mxu0  ;;  %v2250_v12 = vmul.f32 -1.442695, %v1445_v61  ;;  %v1693_v56 = vadd.s32 8, %v1692_v54  ;;  %v1697_v61 = vadd.s32 40, %v1692_v54 }
0x24d1   :  { %v1696_v6 = vadd.s32 32, %v1692_v54  ;;  %v1701_v62 = vand.u32 127, %v1691_v53 }
0x24d2   :  { %2718 = vpow2.f32 %v2250_v12  ;;  %v1695_v12 = vadd.s32 24, %v1692_v54 }
0x24da   :  { %v2717_v55 = vpop.eup %2716 }
0x24db   :  { %1455 = vrot.lane.b32.xlu1 %v2717_v55, %s2805_s17  ;;  %v1713_v55 = vand.u32 7, %v1693_v56 }
0x24dc   :  { %v2719_v43 = vpop.eup %2718 }
0x24dd   :  { %v1449_v63 = vadd.f32 1.0, %v2719_v43  ;;  %vm1799_vm4 = vcmp.eq.s32.totalorder %v1713_v55, %v1701_v62 }
0x24df   :  { %2720 = vrcp.f32 %v1449_v63  ;;  %v1706_v63 = vand.u32 7, %v1692_v54 }
0x24e1   :  { %vm1798_vm5 = vcmp.eq.s32.totalorder %v1706_v63, %v1701_v62 }
0x24e9   :  { %v2721_v58 = vpop.eup %2720 }
0x24ea   :  { %v1453_v25 = vmul.f32 %v2721_v58, %v1386_v47 }
0x254d   :  { %v1456_v3 = vpop.permute.xlu1 %1455 }
0x254e   :  { %v1458_v14 = vmul.f32 %v2721_v58, %v1456_v3  ;;  %v1699_v3 = vadd.s32 56, %v1692_v54 }
0x2550   :  { %1460 = vrot.lane.b32.xlu0 %v1458_v14, %s2806_s3  ;;  %v1741_v14 = vand.u32 7, %v1697_v61 }
0x2552   :  { %vm1803_vm6 = vcmp.eq.s32.totalorder %v1741_v14, %v1701_v62 }
0x25c2   :  { %v1461_v8 = vpop.permute.xlu0 %1460 }
0x25c3   :  { %v1463_v15 = vadd.f32 %v1461_v8, %v1453_v25  ;;  %v1698_v25 = vadd.s32 48, %v1692_v54  ;;  %v1734_v8 = vand.u32 7, %v1696_v6 }
0x25c5   :  { %2722 = vtanh.f32 %v1463_v15  ;;  %vm1802_vm8 = vcmp.eq.s32.totalorder %v1734_v8, %v1701_v62 }
0x25cf   :  { %v2723_v16 = vpop.eup %2722 }
0x25d0   :  { %1466 = vrot.lane.b32.xlu1 %v2723_v16, %s2805_s17  ;;  %v1727_v16 = vand.u32 7, %v1695_v12 }
0x25d2   :  { %vm1801_vm9 = vcmp.eq.s32.totalorder %v1727_v16, %v1701_v62 }
0x2642   :  { %v1467_v10 = vpop.permute.xlu1 %1466 }
0x2643   :  { %v1469_v18 = vmul.f32 %v2721_v58, %v1467_v10  ;;  %v1694_v58 = vadd.s32 16, %v1692_v54 }
0x2645   :  { %v1475_v4 = vpack.c.bf16 %v1469_v18, %v1469_v18 }
0x2647   :  { %1477 = vrot.lane.b32.xlu0 %v1475_v4, %s2806_s3  ;;  %v1755_v4 = vand.u32 7, %v1699_v3 }
0x2649   :  { %vm1805_vm11 = vcmp.eq.s32.totalorder %v1755_v4, %v1701_v62 }
0x26b9   :  { %v1478_v20 = vpop.permute.xlu0 %1477 }
0x26ba   :  { %2507 = vmatmul.mubr.msk.bf16.vlgmr.msra.gmra.mrb[36].mxu1 %vm202_vm3, %v1478_v20  ;;  %v1748_v20 = vand.u32 7, %v1698_v25 }
0x26bb   :  { %2540 = vmatprep.mubr.msk.f32.mxu1 %vm2803_vm0, %v2802_v1 }
0x26bc   :  { %vm1804_vm12 = vcmp.eq.s32.totalorder %v1748_v20, %v1701_v62 }
0x278d   :  { %v1516_v29 = vpop.f32.mrb[36].mxu1 }
0x278e   :  { %v1522_v7 = vadd.f32 %v1516_v29, %v924_v21  ;;  %v2508_v23 = vpop.f32.mrb[37].mxu1 }
0x278f   :  { %v1519_v24 = vpop.f32.mrb[38].mxu1 }
0x2790   :  { %2724 = vtanh.f32 %v1522_v7  ;;  %v2509_v60 = vpop.f32.mrb[39].mxu1  ;;  %v2252_v9 = vmul.f32 -1.442695, %v1522_v7 }
0x2792   :  { %2726 = vpow2.f32 %v2252_v9 }
0x279a   :  { %v2725_v27 = vpop.eup %2724 }
0x279b   :  { %1532 = vrot.lane.b32.xlu1 %v2725_v27, %s2805_s17 }
0x279c   :  { %v2727_v28 = vpop.eup %2726 }
0x279d   :  { %v1526_v30 = vadd.f32 1.0, %v2727_v28 }
0x279f   :  { %2728 = vrcp.f32 %v1526_v30 }
0x27a9   :  { %v2729_v31 = vpop.eup %2728 }
0x27aa   :  { %v1530_v19 = vmul.f32 %v2729_v31, %v1463_v15 }
0x280d   :  { %v1533_v33 = vpop.permute.xlu1 %1532 }
0x280e   :  { %v1535_v35 = vmul.f32 %v2729_v31, %v1533_v33 }
0x2810   :  { %1537 = vrot.lane.b32.xlu0 %v1535_v35, %s2806_s3 }
0x2814   :  { %1009 = vrot.lane.b32.xlu0 %v3134_v39, %s2806_s3  ;;  %v2807_v39 = vmov 0.0|0.0  }
0x2815   :  { %2567 = vmatprep.subr.bf16.mxu1 %v2807_v39 }
0x2818   :  { %1163 = vrot.lane.b32.xlu0 %v3194_v46, %s2806_s3 }
0x2882   :  { %v1538_v59 = vpop.permute.xlu0 %1537 }
0x2883   :  { %v1540_v36 = vadd.f32 %v1538_v59, %v1530_v19 }
0x2885   :  { %2730 = vtanh.f32 %v1540_v36 }
0x2886   :  { %v1010_v37 = vpop.permute.xlu0 %1009 }
0x2887   :  { %1012 = vst.msk [vmem:[#allocation3] sm:$0xff] %vm202_vm3, %v1010_v37 }
0x288a   :  { %v1164_v38 = vpop.permute.xlu0 %1163 }
0x288b   :  { %1166 = vst.msk [vmem:[#allocation3 + $0x10] sm:$0xff] %vm202_vm3, %v1164_v38 }
0x288e   :  { %v1552_v13 = vld [vmem:[#allocation3] sm:$0xff] }
0x288f   :  { %v2731_v40 = vpop.eup %2730  ;;  %2512 = vmatprep.mubr.msk.f32.mxu0 %vm202_vm3, %v1552_v13 }
0x2890   :  { %1543 = vrot.lane.b32.xlu1 %v2731_v40, %s2805_s17 }
0x2892   :  { %v1554_v45 = vld [vmem:[#allocation3 + $0x10] sm:$0xff] }
0x2894   :  { %1086 = vrot.lane.b32.xlu1 %v3163_v17, %s2806_s3 }
0x2898   :  { %1240 = vrot.lane.b32.xlu1 %v3211_v11, %s2806_s3 }
0x289c   :  { %1317 = vrot.lane.b32.xlu1 %v3227_v34, %s2806_s3 }
0x28a0   :  { %1471 = vrot.lane.b32.xlu1 %v1469_v18, %s2806_s3  ;;  %v1720_v18 = vand.u32 7, %v1694_v58 }
0x28a2   :  { %vm1800_vm10 = vcmp.eq.s32.totalorder %v1720_v18, %v1701_v62 }
0x2902   :  { %v1544_v46 = vpop.permute.xlu1 %1543 }
0x2903   :  { %v1546_v41 = vmul.f32 %v2729_v31, %v1544_v46 }
0x2905   :  { %v1996_v5 = vpack.c.bf16 %v1546_v41, %v1546_v41  ;;  %1548 = vrot.lane.b32.xlu0 %v1546_v41, %s2806_s3 }
0x2906   :  { %v1087_v42 = vpop.permute.xlu1 %1086 }
0x2907   :  { %1089 = vst.msk [vmem:[#allocation3 + $0x8] sm:$0xff] %vm202_vm3, %v1087_v42  ;;  %2062 = vrot.lane.b32.xlu1 %v1996_v5, %s2806_s3 }
0x2909   :  { %1394 = vrot.lane.b32.xlu0 %v3243_v22, %s2806_s3 }
0x290a   :  { %v1241_v17 = vpop.permute.xlu1 %1240 }
0x290b   :  { %1243 = vst.msk [vmem:[#allocation3 + $0x18] sm:$0xff] %vm202_vm3, %v1241_v17 }
0x290e   :  { %v1318_v11 = vpop.permute.xlu1 %1317  ;;  %v1553_v34 = vld [vmem:[#allocation3 + $0x8] sm:$0xff] }
0x290f   :  { %1320 = vst.msk [vmem:[#allocation3 + $0x20] sm:$0xff] %vm202_vm3, %v1318_v11  ;;  %v2568_v0 = vpack.c.bf16 %v1553_v34, %v1552_v13 }
0x2911   :  { %2569 = vmatpush3.bf16.msra.mxu1 %v2568_v0 }
0x2912   :  { %v1472_v44 = vpop.permute.xlu1 %1471  ;;  %2570 = vmatprep.subr.bf16.mxu1 %v2807_v39  ;;  %v1555_v57 = vld [vmem:[#allocation3 + $0x18] sm:$0xff] }
0x2913   :  { %1474 = vst.msk [vmem:[#allocation3 + $0x30] sm:$0xff] %vm202_vm3, %v1472_v44  ;;  %v2571_v48 = vpack.c.bf16 %v1555_v57, %v1554_v45 }
0x2915   :  { %2572 = vmatpush3.bf16.msra.mxu1 %v2571_v48 }
0x2916   :  { %2573 = vmatprep.subr.bf16.mxu1 %v2807_v39  ;;  %v1556_v49 = vld [vmem:[#allocation3 + $0x20] sm:$0xff] }
0x291a   :  { %v1558_v32 = vld [vmem:[#allocation3 + $0x30] sm:$0xff] }
0x2977   :  { %v1549_v2 = vpop.permute.xlu0 %1548 }
0x2978   :  { %1551 = vst.msk [vmem:[#allocation3 + $0x38] sm:$0xff] %vm202_vm3, %v1549_v2  ;;  %2510 = vmatprep.subr.msk.mxu0 %vm202_vm3, %v1549_v2 }
0x2979   :  { %2511 = vmatpush3.xpose.msk.msra.mxu0 %vm202_vm3, %v1549_v2 }
0x297a   :  { %2543 = vmatprep.subr.bf16.mxu0 %v2802_v1 }
0x297b   :  { %v1395_v26 = vpop.permute.xlu0 %1394 }
0x297c   :  { %1397 = vst.msk [vmem:[#allocation3 + $0x28] sm:$0xff] %vm202_vm3, %v1395_v26  ;;  %2513 = vmatmul.mubr.msk.f32.vlgmr.msra.gmra.mrb[40].mxu0 %vm202_vm3, %v1553_v34 }
0x297d   :  { %2515 = vmatprep.mubr.msk.f32.mxu0 %vm202_vm3, %v1554_v45 }
0x297f   :  { %v1559_v22 = vld [vmem:[#allocation3 + $0x38] sm:$0xff] }
0x2980   :  { %2516 = vmatmul.mubr.msk.f32.gmra.mrb[42].mxu0 %vm202_vm3, %v1555_v57  ;;  %v2577_v51 = vpack.c.bf16 %v1559_v22, %v1558_v32 }
0x2981   :  { %2518 = vmatprep.mubr.msk.f32.mxu0 %vm202_vm3, %v1556_v49 }
0x2983   :  { %v1557_v47 = vld [vmem:[#allocation3 + $0x28] sm:$0xff] }
0x2984   :  { %2519 = vmatmul.mubr.msk.f32.gmra.mrb[44].mxu0 %vm202_vm3, %v1557_v47  ;;  %v2574_v50 = vpack.c.bf16 %v1557_v47, %v1556_v49 }
0x2985   :  { %2521 = vmatprep.mubr.msk.f32.mxu0 %vm202_vm3, %v1558_v32 }
0x2986   :  { %2575 = vmatpush3.bf16.msra.mxu1 %v2574_v50 }
0x2987   :  { %2576 = vmatprep.subr.bf16.mxu1 %v2807_v39 }
0x2988   :  { %2522 = vmatmul.mubr.msk.f32.gmra.mrb[46].mxu0 %vm202_vm3, %v1559_v22 }
0x2989   :  { %2547 = vmatprep.mubr.msk.bf16.mxu0 %vm2803_vm0, %v2802_v1 }
0x298a   :  { %2578 = vmatpush3.bf16.msra.mxu1 %v2577_v51 }
0x298b   :  { %2551 = vmatprep.subr.bf16.mxu1 %v2802_v1 }
0x2a4f   :  { %v2514_v52 = vpop.f32.mrb[40].mxu0 }
0x2a50   :  { %v1652_v43 = vpop.f32.mrb[41].mxu0  ;;  %v1807_v21 = vsel %vm1799_vm4, %v2514_v52, -inf }
0x2a51   :  { %v1806_v29 = vsel %vm1798_vm5, %v1652_v43, -inf  ;;  %v1816_v60 = vsel %vm1814_vm7, %v1807_v21, -inf }
0x2a52   :  { %v1815_v28 = vsel %vm1814_vm7, %v1806_v29, -inf }
0x2a53   :  { %v2517_v15 = vpop.f32.mrb[42].mxu0 }
0x2a54   :  { %v1662_v10 = vpop.f32.mrb[43].mxu0  ;;  %v1809_v30 = vsel %vm1801_vm9, %v2517_v15, -inf }
0x2a55   :  { %v1808_v35 = vsel %vm1800_vm10, %v1662_v10, -inf  ;;  %v1818_v38 = vsel %vm1814_vm7, %v1809_v30, -inf }
0x2a56   :  { %v1817_v46 = vsel %vm1814_vm7, %v1808_v35, -inf }
0x2a57   :  { %v2520_v7 = vpop.f32.mrb[44].mxu0 }
0x2a58   :  { %v1811_v23 = vsel %vm1803_vm6, %v2520_v7, -inf  ;;  %v1672_v24 = vpop.f32.mrb[45].mxu0 }
0x2a59   :  { %v1821_v27 = vsel %vm1814_vm7, %v1811_v23, -inf  ;;  %v1810_v9 = vsel %vm1802_vm8, %v1672_v24, -inf }
0x2a5a   :  { %v1822_v31 = vmax.f32 %v1816_v60, %v1821_v27  ;;  %v1819_v33 = vsel %vm1814_vm7, %v1810_v9, -inf }
0x2a5b   :  { %v1820_v19 = vmax.f32 %v1815_v28, %v1819_v33  ;;  %v2523_v59 = vpop.f32.mrb[46].mxu0 }
0x2a5c   :  { %v1813_v36 = vsel %vm1805_vm11, %v2523_v59, -inf  ;;  %v1682_v37 = vpop.f32.mrb[47].mxu0 }
0x2a5d   :  { %v1827_v13 = vmax.f32 %v1820_v19, %v1822_v31  ;;  %v1825_v40 = vsel %vm1814_vm7, %v1813_v36, -inf  ;;  %v1812_v39 = vsel %vm1804_vm12, %v1682_v37, -inf }
0x2a5e   :  { %v1826_v41 = vmax.f32 %v1818_v38, %v1825_v40  ;;  %v1823_v5 = vsel %vm1814_vm7, %v1812_v39, -inf }
0x2a5f   :  { %v1824_v42 = vmax.f32 %v1817_v46, %v1823_v5 }
0x2a61   :  { %v1828_v17 = vmax.f32 %v1824_v42, %v1826_v41  ;;  %v2600_v42 = vld [vmem:[%s3359_s8] sm:$0xff]  }
0x2a62   :  { %2544 = vmatpush3.bf16.msra.mxu0 %v2600_v42 }
0x2a63   :  { %v1829_v11 = vmax.f32 %v1827_v13, %v1828_v17  ;;  %2545 = vmatprep.subr.bf16.mxu0 %v2802_v1  ;;  %v2598_v17 = vld [vmem:[%s3358_s7] sm:$0xff]  }
0x2a65   :  { %v1830_v34 = vrot.slane %v1829_v11, 4 }
0x2a67   :  { %v1831_v0 = vmax.f32 %v1829_v11, %v1830_v34  ;;  %v2599_v34 = vld [vmem:[%s3358_s7 + $0x8] sm:$0xff]  }
0x2a69   :  { %v1832_v44 = vrot.slane %v1831_v0, 2 }
0x2a6b   :  { %v1833_v45 = vmax.f32 %v1831_v0, %v1832_v44  ;;  %v2063_v0 = vpop.permute.xlu1 %2062  ;;  %v2601_v44 = vld [vmem:[%s3359_s8 + $0x8] sm:$0xff]  }
0x2a6c   :  { %2546 = vmatpush3.bf16.msra.mxu0 %v2601_v44 }
0x2a6d   :  { %v1834_v57 = vrot.slane %v1833_v45, 1  ;;  %2559 = vmatprep.subr.bf16.mxu0 %v2802_v1 }
0x2a6f   :  { %v1835_v48 = vmax.f32 %v1833_v45, %v1834_v57 }
0x2a71   :  { %v1841_v2 = vsub.f32 %v1811_v23, %v1835_v48  ;;  %v1842_v26 = vsub.f32 %v1812_v39, %v1835_v48  ;;  %v1843_v49 = vsub.f32 %v1813_v36, %v1835_v48  ;;  %v1836_v47 = vsub.f32 %v1806_v29, %v1835_v48 }
0x2a72   :  { %v1837_v50 = vsub.f32 %v1807_v21, %v1835_v48  ;;  %v1838_v32 = vsub.f32 %v1808_v35, %v1835_v48  ;;  %v1839_v22 = vsub.f32 %v1809_v30, %v1835_v48  ;;  %v1840_v51 = vsub.f32 %v1810_v9, %v1835_v48 }
0x2a73   :  { %v1844_v53 = vmul.f32 1.442695, %v1836_v47  ;;  %v1854_v52 = vmul.f32 1.442695, %v1841_v2  ;;  %v1856_v62 = vmul.f32 1.442695, %v1842_v26 }
0x2a74   :  { %v1846_v54 = vmul.f32 1.442695, %v1837_v50  ;;  %v1848_v56 = vmul.f32 1.442695, %v1838_v32  ;;  %v1850_v61 = vmul.f32 1.442695, %v1839_v22 }
0x2a75   :  { %2732 = vpow2.f32 %v1844_v53  ;;  %v1852_v6 = vmul.f32 1.442695, %v1840_v51  ;;  %v1858_v55 = vmul.f32 1.442695, %v1843_v49  ;;  %v2602_v50 = vld [vmem:[%s3361_s10] sm:$0xff]   ;;  %v2603_v32 = vld [vmem:[%s3361_s10 + $0x8] sm:$0xff]  }
0x2a76   :  { %2734 = vpow2.f32 %v1846_v54  ;;  %v2269_v51 = vld [vmem:[%s3360_s9] ss:$0 sm:$0xff] }
0x2a77   :  { %2736 = vpow2.f32 %v1848_v56 }
0x2a78   :  { %2738 = vpow2.f32 %v1850_v61 }
0x2a79   :  { %2740 = vpow2.f32 %v1852_v6 }
0x2a7a   :  { %2742 = vpow2.f32 %v1854_v52 }
0x2a7b   :  { %2744 = vpow2.f32 %v1856_v62 }
0x2a7c   :  { %2746 = vpow2.f32 %v1858_v55 }
0x2a7f   :  { %v2733_v12 = vpop.eup %2732 }
0x2a80   :  { %v2735_v43 = vpop.eup %2734  ;;  %v1860_v63 = vsel %vm1814_vm7, %v2733_v12, 0.0 }
0x2a81   :  { %v2737_v58 = vpop.eup %2736  ;;  %v1861_v3 = vsel %vm1814_vm7, %v2735_v43, 0.0 }
0x2a82   :  { %v2739_v14 = vpop.eup %2738  ;;  %v1862_v25 = vadd.f32 %v1861_v3, %v1860_v63  ;;  %v1863_v8 = vsel %vm1814_vm7, %v2737_v58, 0.0 }
0x2a83   :  { %v2741_v15 = vpop.eup %2740  ;;  %v1865_v10 = vsel %vm1814_vm7, %v2739_v14, 0.0 }
0x2a84   :  { %v1864_v16 = vadd.f32 %v1863_v8, %v1862_v25  ;;  %v2743_v18 = vpop.eup %2742  ;;  %v1867_v20 = vsel %vm1814_vm7, %v2741_v15, 0.0 }
0x2a85   :  { %v2745_v21 = vpop.eup %2744  ;;  %v1869_v7 = vsel %vm1814_vm7, %v2743_v18, 0.0 }
0x2a86   :  { %v1866_v4 = vadd.f32 %v1865_v10, %v1864_v16  ;;  %v2747_v23 = vpop.eup %2746  ;;  %v1871_v60 = vsel %vm1814_vm7, %v2745_v21, 0.0 }
0x2a87   :  { %v1873_v9 = vsel %vm1814_vm7, %v2747_v23, 0.0 }
0x2a88   :  { %v1868_v29 = vadd.f32 %v1867_v20, %v1866_v4 }
0x2a8a   :  { %v1870_v24 = vadd.f32 %v1869_v7, %v1868_v29 }
0x2a8c   :  { %v1872_v27 = vadd.f32 %v1871_v60, %v1870_v24 }
0x2a8e   :  { %v1874_v28 = vadd.f32 %v1873_v9, %v1872_v27 }
0x2a90   :  { %v1875_v30 = vrot.slane %v1874_v28, 4 }
0x2a92   :  { %v1876_v31 = vadd.f32 %v1875_v30, %v1874_v28 }
0x2a94   :  { %v1877_v33 = vrot.slane %v1876_v31, 2 }
0x2a96   :  { %v1878_v35 = vadd.f32 %v1877_v33, %v1876_v31 }
0x2a98   :  { %v1879_v19 = vrot.slane %v1878_v35, 1 }
0x2a9a   :  { %v1880_v59 = vadd.f32 %v1879_v19, %v1878_v35 }
0x2a9c   :  { %2748 = vrcp.f32 %v1880_v59 }
0x2aa6   :  { %v2749_v36 = vpop.eup %2748 }
0x2aa7   :  { %v1882_v37 = vmul.f32 %v2749_v36, %v2733_v12  ;;  %v1883_v38 = vmul.f32 %v2749_v36, %v2735_v43  ;;  %v1884_v13 = vmul.f32 %v2749_v36, %v2737_v58  ;;  %v1885_v40 = vmul.f32 %v2749_v36, %v2739_v14 }
0x2aa8   :  { %v1886_v39 = vmul.f32 %v2749_v36, %v2741_v15  ;;  %v1887_v46 = vmul.f32 %v2749_v36, %v2743_v18  ;;  %v1888_v41 = vmul.f32 %v2749_v36, %v2745_v21  ;;  %v1889_v5 = vmul.f32 %v2749_v36, %v2747_v23 }
0x2aa9   :  { %1890 = vxpose.xlu0.b32.start [1/8] (short) (narrow) %v1882_v37, 8 }
0x2aad   :  { %1891 = vxpose.xlu0.b32.cont [2/8] (short) (narrow) %v1883_v38, 8 }
0x2ab1   :  { %1892 = vxpose.xlu0.b32.cont [3/8] (short) (narrow) %v1884_v13, 8 }
0x2ab5   :  { %1893 = vxpose.xlu0.b32.cont [4/8] (short) (narrow) %v1885_v40, 8 }
0x2ab9   :  { %1894 = vxpose.xlu0.b32.cont [5/8] (short) (narrow) %v1886_v39, 8 }
0x2abd   :  { %1895 = vxpose.xlu0.b32.cont [6/8] (short) (narrow) %v1887_v46, 8 }
0x2ac1   :  { %1896 = vxpose.xlu0.b32.cont [7/8] (short) (narrow) %v1888_v41, 8 }
0x2ac5   :  { %1897 = vxpose.xlu0.b32.end [8/8] (short) (narrow) %v1889_v5, 8 }
0x2b29   :  { %v1906_v11 = vpop.trf.xlu0 }
0x2b2a   :  { %2541 = vmatmul.mubr.msk.f32.vlgmr.msra.gmra.mrb[40].mxu1 %vm1922_vm13, %v1906_v11 }
0x2b2b   :  { %2552 = vmatpush3.bf16.msra.mxu1 %v2598_v17  ;;  %2555 = vmatprep.mubr.msk.bf16.mxu1 %vm2803_vm0, %v2802_v1 }
0x2b2c   :  { %2553 = vmatprep.subr.bf16.mxu1 %v2802_v1 }
0x2b2f   :  { %2554 = vmatpush3.bf16.msra.mxu1 %v2599_v34 }
0x2b32   :  { %2556 = vmatmul.mubr.msk.bf16.vlgmr.msra.gmra.mrb[44].mxu1 %vm202_vm3, %v2063_v0 }
0x2bfd   :  { %v1992_v45 = vpop.f32.mrb[40].mxu1 }
0x2bfe   :  { %v2001_v57 = vpack.c.bf16 %v1992_v45, %v1992_v45  ;;  %v2542_v48 = vpop.f32.mrb[41].mxu1 }
0x2c00   :  { %2548 = vmatmul.mubr.msk.bf16.vlgmr.msra.gmra.mrb[48].mxu0 %vm202_vm3, %v2001_v57 }
0x2c01   :  { %2563 = vmatprep.mubr.msk.bf16.mxu0 %vm2803_vm0, %v2802_v1  ;;  %2560 = vmatpush3.bf16.msra.mxu0 %v2602_v50 }
0x2c02   :  { %2561 = vmatprep.subr.bf16.mxu0 %v2802_v1  ;;  %v2270_v1 = vld [vmem:[#allocation4] ss:$0 sm:$0xff] }
0x2c05   :  { %v2113_v2 = vpop.f32.mrb[44].mxu1  ;;  %2562 = vmatpush3.bf16.msra.mxu0 %v2603_v32 }
0x2c06   :  { %v2557_v26 = vpop.f32.mrb[45].mxu1 }
0x2c07   :  { %v2116_v49 = vpop.f32.mrb[46].mxu1 }
0x2c08   :  { %v2558_v47 = vpop.f32.mrb[47].mxu1 }
0x2cd3   :  { %v2055_v22 = vpop.f32.mrb[48].mxu0 }
0x2cd4   :  { %v2114_v53 = vadd.f32 %v2113_v2, %v2055_v22  ;;  %v2549_v54 = vpop.f32.mrb[49].mxu0 }
0x2cd5   :  { %v2058_v56 = vpop.f32.mrb[50].mxu0 }
0x2cd6   :  { %v2126_v61 = vadd.f32 %v2269_v51, %v2114_v53  ;;  %v2550_v6 = vpop.f32.mrb[51].mxu0 }
0x2cd8   :  { %2750 = vtanh.f32 %v2126_v61 }
0x2ce2   :  { %v2751_v52 = vpop.eup %2750 }
0x2ce3   :  { %v2128_v62 = vpack.c.bf16 %v2751_v52, %v2751_v52 }
0x2ce5   :  { %2564 = vmatmul.mubr.msk.bf16.vlgmr.msra.gmra.mrb[52].mxu0 %vm202_vm3, %v2128_v62 }
0x2db8   :  { %v2189_v55 = vpop.f32.mrb[52].mxu0 }
0x2db9   :  { %v2190_v12 = vadd.f32 %v2270_v1, %v2189_v55  ;;  %v2565_v43 = vpop.f32.mrb[53].mxu0 }
0x2dba   :  { %v2192_v63 = vpop.f32.mrb[54].mxu0 }
0x2dbb   :  { %2196 = vst.msk [vmem:[%s3363_s12] sm:$0xff] %vm2195_vm14, %v2190_v12  ;;  %v2566_v58 = vpop.f32.mrb[55].mxu0 }
0x2dbc   :  { %2201 = vsyncpa [#allocation6], 1 }
0x2dbd   :  { %2202 = vsyncpa [#allocation8], 1 }

</bundles_post_ra>
